<compile_context>
chip_gen: v6e
topology: v6e:2x2x1
jax: 0.10.0
libtpu: 0.0.40
codegen_flags: <defaults>
</compile_context>

<pallas_src>
import jax
import jax.numpy as jnp
from jax.experimental import pallas as pl
from jax.experimental.pallas import tpu as pltpu


def _decoder_kernel(x_ref, wih_ref, whh_ref, bx_ref, bhn_ref,
                    w1_ref, b1_ref, w2_ref, b2_ref, wh_ref, bh_ref,
                    out_ref, h_slab):
    """Whole Decoder forward in one kernel invocation (grid=(1,))."""
    B, T, D_in = x_ref.shape
    H = whh_ref.shape[0]
    D_out = out_ref.shape[1] // 2

    # ---- Hoisted, time/batch-parallel input projection ----------------------
    x2 = x_ref[...].reshape(B * T, D_in)                       # contiguous reshape
    gx_all = jnp.dot(x2, wih_ref[...],
                     preferred_element_type=jnp.float32) + bx_ref[...]
    gx_all = gx_all.reshape(B, T, 3 * H)                       # (B, T, 3H)
    # Pre-split the r/z/n gate slabs once (no per-step lane slicing on gx).
    gxr_all = gx_all[:, :, 0:H]
    gxz_all = gx_all[:, :, H:2 * H]
    gxn_all = gx_all[:, :, 2 * H:]

    w_hh = whh_ref[...]                                        # (H, 3H)
    b_hn = jnp.broadcast_to(bhn_ref[...], (B, H))              # hoisted broadcast

    # ---- Sequential GRU recurrence (fully unrolled; T is small) -------------
    h = jnp.zeros((B, H), jnp.float32)                         # PyTorch h0 = 0
    for t in range(T):
        gh = jnp.dot(h, w_hh, preferred_element_type=jnp.float32)   # (B, 3H)
        r = jax.nn.sigmoid(gxr_all[:, t, :] + gh[:, 0:H])
        z = jax.nn.sigmoid(gxz_all[:, t, :] + gh[:, H:2 * H])
        n = jnp.tanh(gxn_all[:, t, :] + r * (gh[:, 2 * H:] + b_hn))
        h = (1.0 - z) * n + z * h
        h_slab[:, t, :] = h

    # ---- Batched dense trunk + fused heads over all (B*T) rows --------------
    h_all = h_slab[...].reshape(B * T, H)
    h1 = jnp.maximum(
        jnp.dot(h_all, w1_ref[...], preferred_element_type=jnp.float32)
        + b1_ref[...], 0.0)
    h2 = jnp.maximum(
        jnp.dot(h1, w2_ref[...], preferred_element_type=jnp.float32)
        + b2_ref[...], 0.0)
    y = jnp.dot(h2, wh_ref[...], preferred_element_type=jnp.float32) + bh_ref[...]

    # Softplus only on the std half (lanes >= D_out); mean half passes through.
    lane = jax.lax.broadcasted_iota(jnp.int32, y.shape, 1)
    y = jnp.where(lane < D_out, y, jax.nn.softplus(y))
    out_ref[...] = y.astype(out_ref.dtype)


@jax.jit
def decoder_forward(x, params):
    """x: (B, T, input_dim) batch-first, like the PyTorch module."""
    B, T, D_in = x.shape
    H = params["w_hh_t"].shape[0]       # rnn_dim
    D_dense = params["w1"].shape[1]     # dense_dim
    D_out = params["wm"].shape[1]       # output_dim

    # One-time parameter prep (XLA side, negligible):
    #   * fold b_ih + b_hh for the r/z gates into a single input-side bias,
    #   * keep b_hn separate (it sits inside r * (W_hn h + b_hn)),
    #   * fuse the mean/std head weights & biases.
    b_ih, b_hh = params["b_ih"], params["b_hh"]
    b_x = jnp.concatenate(
        [b_ih[:, :2 * H] + b_hh[:, :2 * H], b_ih[:, 2 * H:]], axis=1)   # (1, 3H)
    b_hn = b_hh[:, 2 * H:]                                              # (1, H)
    w_heads = jnp.concatenate([params["wm"], params["ws"]], axis=1)     # (D_dense, 2*D_out)
    b_heads = jnp.concatenate([params["bm"], params["bs"]], axis=1)     # (1, 2*D_out)

    full2 = lambda i: (0, 0)

    y = pl.pallas_call(
        _decoder_kernel,
        out_shape=jax.ShapeDtypeStruct((B * T, 2 * D_out), x.dtype),
        grid=(1,),
        in_specs=[
            pl.BlockSpec((B, T, D_in), lambda i: (0, 0, 0)),   # x (batch-first)
            pl.BlockSpec((D_in, 3 * H), full2),                # W_ih^T
            pl.BlockSpec((H, 3 * H), full2),                   # W_hh^T
            pl.BlockSpec((1, 3 * H), full2),                   # folded input-side bias
            pl.BlockSpec((1, H), full2),                       # b_hn
            pl.BlockSpec((H, D_dense), full2),                 # W1^T
            pl.BlockSpec((1, D_dense), full2),                 # b1
            pl.BlockSpec((D_dense, D_dense), full2),           # W2^T
            pl.BlockSpec((1, D_dense), full2),                 # b2
            pl.BlockSpec((D_dense, 2 * D_out), full2),         # [Wmean | Wstd]^T
            pl.BlockSpec((1, 2 * D_out), full2),               # [bmean | bstd]
        ],
        out_specs=pl.BlockSpec((B * T, 2 * D_out), full2),     # lane-fused output slab
        scratch_shapes=[pltpu.VMEM((B, T, H), jnp.float32)],   # per-timestep hidden states
        compiler_params=pltpu.CompilerParams(
            dimension_semantics=("arbitrary",),
        ),
    )(x, params["w_ih_t"], params["w_hh_t"], b_x, b_hn,
      params["w1"], params["b1"], params["w2"], params["b2"],
      w_heads, b_heads)

    y = y.reshape(B, T, 2 * D_out)                             # contiguous reshape
    mean = y[..., :D_out]
    std = y[..., D_out:]
    return mean, std


def decoder_reference(x, params):
    """Pure-JAX reference of the PyTorch module (for correctness check)."""
    H = params["w_hh_t"].shape[0]
    B = x.shape[0]

    def gru_step(h, x_t):
        gx = x_t @ params["w_ih_t"] + params["b_ih"]
        gh = h @ params["w_hh_t"] + params["b_hh"]
        r = jax.nn.sigmoid(gx[:, :H] + gh[:, :H])
        z = jax.nn.sigmoid(gx[:, H:2 * H] + gh[:, H:2 * H])
        n = jnp.tanh(gx[:, 2 * H:] + r * gh[:, 2 * H:])
        h_new = (1.0 - z) * n + z * h
        return h_new, h_new

    h0 = jnp.zeros((B, H), dtype=x.dtype)
    _, hs = jax.lax.scan(gru_step, h0, jnp.transpose(x, (1, 0, 2)))
    e = jnp.transpose(hs, (1, 0, 2))                           # (B, T, H)
    e = jnp.maximum(e @ params["w1"] + params["b1"], 0.0)
    e = jnp.maximum(e @ params["w2"] + params["b2"], 0.0)
    mean = e @ params["wm"] + params["bm"]
    std = jax.nn.softplus(e @ params["ws"] + params["bs"])
    return mean, std


def make_params(key, input_dim, output_dim, rnn_dim, dense_dim, dtype=jnp.float32):
    """Deterministic synthetic parameters with the same shapes as the nn.Module.

    Weights are stored pre-transposed (in_features, out_features) so the kernel
    right-multiplies: y = x @ W^T_torch  ==  x @ w_here.
    """
    ks = jax.random.split(key, 13)
    s = 0.2
    return {
        "w_ih_t": s * jax.random.normal(ks[0], (input_dim, 3 * rnn_dim), dtype),
        "w_hh_t": s * jax.random.normal(ks[1], (rnn_dim, 3 * rnn_dim), dtype),
        "b_ih": s * jax.random.normal(ks[2], (1, 3 * rnn_dim), dtype),
        "b_hh": s * jax.random.normal(ks[3], (1, 3 * rnn_dim), dtype),
        "w1": s * jax.random.normal(ks[4], (rnn_dim, dense_dim), dtype),
        "b1": s * jax.random.normal(ks[5], (1, dense_dim), dtype),
        "w2": s * jax.random.normal(ks[6], (dense_dim, dense_dim), dtype),
        "b2": s * jax.random.normal(ks[7], (1, dense_dim), dtype),
        "wm": s * jax.random.normal(ks[8], (dense_dim, output_dim), dtype),
        "bm": s * jax.random.normal(ks[9], (1, output_dim), dtype),
        "ws": s * jax.random.normal(ks[10], (dense_dim, output_dim), dtype),
        "bs": s * jax.random.normal(ks[11], (1, output_dim), dtype),
    }


if __name__ == "__main__":
    # Small shapes consistent with the module: latent input -> reconstructed output.
    B, T = 2, 8
    input_dim, output_dim, rnn_dim, dense_dim = 4, 16, 32, 32

    key = jax.random.PRNGKey(0)
    k_x, k_p = jax.random.split(key)
    x = jax.random.normal(k_x, (B, T, input_dim), jnp.float32)   # (batch, seq, input_dim)
    params = make_params(k_p, input_dim, output_dim, rnn_dim, dense_dim)

    mean, std = decoder_forward(x, params)
    jax.block_until_ready((mean, std))

    # Cross-check against the pure-JAX reference of the PyTorch forward.
    mean_ref, std_ref = decoder_reference(x, params)
    assert mean.shape == (B, T, output_dim) and std.shape == (B, T, output_dim)
    assert jnp.allclose(mean, mean_ref, rtol=1e-5, atol=1e-5)
    assert jnp.allclose(std, std_ref, rtol=1e-5, atol=1e-5)
    assert bool(jnp.all(std > 0.0))  # softplus positivity

    print("KERNEL_OK")
</pallas_src>

<mosaic_0001>
module attributes {stable_mosaic.version = 11 : i64} {
  func.func @_decoder_kernel(%arg0: i32, %arg1: memref<2x8x4xf32, #tpu.memory_space<vmem>>, %arg2: memref<4x96xf32, #tpu.memory_space<vmem>>, %arg3: memref<32x96xf32, #tpu.memory_space<vmem>>, %arg4: memref<1x96xf32, #tpu.memory_space<vmem>>, %arg5: memref<1x32xf32, #tpu.memory_space<vmem>>, %arg6: memref<32x32xf32, #tpu.memory_space<vmem>>, %arg7: memref<1x32xf32, #tpu.memory_space<vmem>>, %arg8: memref<32x32xf32, #tpu.memory_space<vmem>>, %arg9: memref<1x32xf32, #tpu.memory_space<vmem>>, %arg10: memref<32x32xf32, #tpu.memory_space<vmem>>, %arg11: memref<1x32xf32, #tpu.memory_space<vmem>>, %arg12: memref<16x32xf32, #tpu.memory_space<vmem>>, %arg13: memref<2x8x32xf32, #tpu.memory_space<vmem>>) attributes {dimension_semantics = [#tpu.dimension_semantics<arbitrary>], iteration_bounds = array<i64: 1>, scalar_prefetch = 0 : i64, scratch_operands = 1 : i64, tpu.core_type = #tpu.core_type<tc>, window_params = [{pipeline_mode = #tpu.pipeline_mode<synchronous>, transform_indices = @transform_0, window_bounds = array<i64: 2, 8, 4>}, {pipeline_mode = #tpu.pipeline_mode<synchronous>, transform_indices = @transform_1, window_bounds = array<i64: 4, 96>}, {pipeline_mode = #tpu.pipeline_mode<synchronous>, transform_indices = @transform_2, window_bounds = array<i64: 32, 96>}, {pipeline_mode = #tpu.pipeline_mode<synchronous>, transform_indices = @transform_3, window_bounds = array<i64: 1, 96>}, {pipeline_mode = #tpu.pipeline_mode<synchronous>, transform_indices = @transform_4, window_bounds = array<i64: 1, 32>}, {pipeline_mode = #tpu.pipeline_mode<synchronous>, transform_indices = @transform_5, window_bounds = array<i64: 32, 32>}, {pipeline_mode = #tpu.pipeline_mode<synchronous>, transform_indices = @transform_6, window_bounds = array<i64: 1, 32>}, {pipeline_mode = #tpu.pipeline_mode<synchronous>, transform_indices = @transform_7, window_bounds = array<i64: 32, 32>}, {pipeline_mode = #tpu.pipeline_mode<synchronous>, transform_indices = @transform_8, window_bounds = array<i64: 1, 32>}, {pipeline_mode = #tpu.pipeline_mode<synchronous>, transform_indices = @transform_9, window_bounds = array<i64: 32, 32>}, {pipeline_mode = #tpu.pipeline_mode<synchronous>, transform_indices = @transform_10, window_bounds = array<i64: 1, 32>}, {pipeline_mode = #tpu.pipeline_mode<synchronous>, transform_indices = @transform_11, window_bounds = array<i64: 16, 32>}]} {
    %c0 = arith.constant 0 : index
    %c0_0 = arith.constant 0 : index
    %c0_1 = arith.constant 0 : index
    %0 = vector.load %arg1[%c0, %c0_0, %c0_1] : memref<2x8x4xf32, #tpu.memory_space<vmem>>, vector<2x8x4xf32>
    %1 = vector.shape_cast %0 : vector<2x8x4xf32> to vector<16x4xf32>
    %c0_2 = arith.constant 0 : index
    %c0_3 = arith.constant 0 : index
    %2 = vector.load %arg2[%c0_2, %c0_3] : memref<4x96xf32, #tpu.memory_space<vmem>>, vector<4x96xf32>
    %cst = arith.constant dense<0.000000e+00> : vector<16x96xf32>
    %3 = tpu.matmul %1, %2, %cst {dimension_numbers = #tpu.dot_dimension_numbers<[1], [0], [0], [1], [0, 0, 1, 1], [], []>} : vector<16x4xf32>, vector<4x96xf32>, vector<16x96xf32> -> vector<16x96xf32>
    %c0_4 = arith.constant 0 : index
    %c0_5 = arith.constant 0 : index
    %4 = vector.load %arg4[%c0_4, %c0_5] : memref<1x96xf32, #tpu.memory_space<vmem>>, vector<1x96xf32>
    %5 = vector.broadcast %4 : vector<1x96xf32> to vector<16x96xf32>
    %6 = arith.addf %3, %5 : vector<16x96xf32>
    %7 = vector.shape_cast %6 : vector<16x96xf32> to vector<2x8x96xf32>
    %8 = vector.extract_strided_slice %7 {offsets = [0, 0, 0], sizes = [2, 8, 32], strides = [1, 1, 1]} : vector<2x8x96xf32> to vector<2x8x32xf32>
    %9 = vector.extract_strided_slice %7 {offsets = [0, 0, 32], sizes = [2, 8, 32], strides = [1, 1, 1]} : vector<2x8x96xf32> to vector<2x8x32xf32>
    %10 = vector.extract_strided_slice %7 {offsets = [0, 0, 64], sizes = [2, 8, 32], strides = [1, 1, 1]} : vector<2x8x96xf32> to vector<2x8x32xf32>
    %c0_6 = arith.constant 0 : index
    %c0_7 = arith.constant 0 : index
    %11 = vector.load %arg3[%c0_6, %c0_7] : memref<32x96xf32, #tpu.memory_space<vmem>>, vector<32x96xf32>
    %c0_8 = arith.constant 0 : index
    %c0_9 = arith.constant 0 : index
    %12 = vector.load %arg5[%c0_8, %c0_9] : memref<1x32xf32, #tpu.memory_space<vmem>>, vector<1x32xf32>
    %13 = vector.shape_cast %12 : vector<1x32xf32> to vector<1x32xf32>
    %14 = vector.broadcast %13 : vector<1x32xf32> to vector<2x32xf32>
    %cst_10 = arith.constant 0.000000e+00 : f32
    %15 = vector.broadcast %cst_10 : f32 to vector<2x32xf32>
    %cst_11 = arith.constant dense<0.000000e+00> : vector<2x96xf32>
    %16 = tpu.matmul %15, %11, %cst_11 {dimension_numbers = #tpu.dot_dimension_numbers<[1], [0], [0], [1], [0, 0, 1, 1], [], []>} : vector<2x32xf32>, vector<32x96xf32>, vector<2x96xf32> -> vector<2x96xf32>
    %17 = vector.extract_strided_slice %8 {offsets = [0, 0, 0], sizes = [2, 1, 32], strides = [1, 1, 1]} : vector<2x8x32xf32> to vector<2x1x32xf32>
    %18 = vector.shape_cast %17 : vector<2x1x32xf32> to vector<2x32xf32>
    %19 = vector.extract_strided_slice %16 {offsets = [0, 0], sizes = [2, 32], strides = [1, 1]} : vector<2x96xf32> to vector<2x32xf32>
    %20 = arith.addf %18, %19 : vector<2x32xf32>
    %21 = arith.negf %20 : vector<2x32xf32>
    %22 = math.exp %21 : vector<2x32xf32>
    %cst_12 = arith.constant 1.000000e+00 : f32
    %23 = vector.broadcast %cst_12 : f32 to vector<2x32xf32>
    %24 = arith.addf %23, %22 : vector<2x32xf32>
    %25 = arith.divf %23, %24 : vector<2x32xf32>
    %26 = vector.extract_strided_slice %9 {offsets = [0, 0, 0], sizes = [2, 1, 32], strides = [1, 1, 1]} : vector<2x8x32xf32> to vector<2x1x32xf32>
    %27 = vector.shape_cast %26 : vector<2x1x32xf32> to vector<2x32xf32>
    %28 = vector.extract_strided_slice %16 {offsets = [0, 32], sizes = [2, 32], strides = [1, 1]} : vector<2x96xf32> to vector<2x32xf32>
    %29 = arith.addf %27, %28 : vector<2x32xf32>
    %30 = arith.negf %29 : vector<2x32xf32>
    %31 = math.exp %30 : vector<2x32xf32>
    %cst_13 = arith.constant 1.000000e+00 : f32
    %32 = vector.broadcast %cst_13 : f32 to vector<2x32xf32>
    %33 = arith.addf %32, %31 : vector<2x32xf32>
    %34 = arith.divf %32, %33 : vector<2x32xf32>
    %35 = vector.extract_strided_slice %10 {offsets = [0, 0, 0], sizes = [2, 1, 32], strides = [1, 1, 1]} : vector<2x8x32xf32> to vector<2x1x32xf32>
    %36 = vector.shape_cast %35 : vector<2x1x32xf32> to vector<2x32xf32>
    %37 = vector.extract_strided_slice %16 {offsets = [0, 64], sizes = [2, 32], strides = [1, 1]} : vector<2x96xf32> to vector<2x32xf32>
    %38 = arith.addf %37, %14 : vector<2x32xf32>
    %39 = arith.mulf %25, %38 : vector<2x32xf32>
    %40 = arith.addf %36, %39 : vector<2x32xf32>
    %41 = math.tanh %40 : vector<2x32xf32>
    %cst_14 = arith.constant 1.000000e+00 : f32
    %42 = vector.broadcast %cst_14 : f32 to vector<2x32xf32>
    %43 = arith.subf %42, %34 : vector<2x32xf32>
    %44 = arith.mulf %43, %41 : vector<2x32xf32>
    %45 = arith.mulf %34, %15 : vector<2x32xf32>
    %46 = arith.addf %44, %45 : vector<2x32xf32>
    %c0_15 = arith.constant 0 : index
    %c0_16 = arith.constant 0 : index
    %c0_17 = arith.constant 0 : index
    %47 = vector.load %arg13[%c0_15, %c0_16, %c0_17] : memref<2x8x32xf32, #tpu.memory_space<vmem>>, vector<2x1x32xf32>
    %48 = vector.shape_cast %47 : vector<2x1x32xf32> to vector<2x32xf32>
    %49 = vector.shape_cast %46 : vector<2x32xf32> to vector<2x1x32xf32>
    tpu.vector_store %arg13[%c0_15, %c0_16, %c0_17], %49 {strides = array<i32>} : memref<2x8x32xf32, #tpu.memory_space<vmem>>, vector<2x1x32xf32>,
    %cst_18 = arith.constant dense<0.000000e+00> : vector<2x96xf32>
    %50 = tpu.matmul %46, %11, %cst_18 {dimension_numbers = #tpu.dot_dimension_numbers<[1], [0], [0], [1], [0, 0, 1, 1], [], []>} : vector<2x32xf32>, vector<32x96xf32>, vector<2x96xf32> -> vector<2x96xf32>
    %51 = vector.extract_strided_slice %8 {offsets = [0, 1, 0], sizes = [2, 1, 32], strides = [1, 1, 1]} : vector<2x8x32xf32> to vector<2x1x32xf32>
    %52 = vector.shape_cast %51 : vector<2x1x32xf32> to vector<2x32xf32>
    %53 = vector.extract_strided_slice %50 {offsets = [0, 0], sizes = [2, 32], strides = [1, 1]} : vector<2x96xf32> to vector<2x32xf32>
    %54 = arith.addf %52, %53 : vector<2x32xf32>
    %55 = arith.negf %54 : vector<2x32xf32>
    %56 = math.exp %55 : vector<2x32xf32>
    %cst_19 = arith.constant 1.000000e+00 : f32
    %57 = vector.broadcast %cst_19 : f32 to vector<2x32xf32>
    %58 = arith.addf %57, %56 : vector<2x32xf32>
    %59 = arith.divf %57, %58 : vector<2x32xf32>
    %60 = vector.extract_strided_slice %9 {offsets = [0, 1, 0], sizes = [2, 1, 32], strides = [1, 1, 1]} : vector<2x8x32xf32> to vector<2x1x32xf32>
    %61 = vector.shape_cast %60 : vector<2x1x32xf32> to vector<2x32xf32>
    %62 = vector.extract_strided_slice %50 {offsets = [0, 32], sizes = [2, 32], strides = [1, 1]} : vector<2x96xf32> to vector<2x32xf32>
    %63 = arith.addf %61, %62 : vector<2x32xf32>
    %64 = arith.negf %63 : vector<2x32xf32>
    %65 = math.exp %64 : vector<2x32xf32>
    %cst_20 = arith.constant 1.000000e+00 : f32
    %66 = vector.broadcast %cst_20 : f32 to vector<2x32xf32>
    %67 = arith.addf %66, %65 : vector<2x32xf32>
    %68 = arith.divf %66, %67 : vector<2x32xf32>
    %69 = vector.extract_strided_slice %10 {offsets = [0, 1, 0], sizes = [2, 1, 32], strides = [1, 1, 1]} : vector<2x8x32xf32> to vector<2x1x32xf32>
    %70 = vector.shape_cast %69 : vector<2x1x32xf32> to vector<2x32xf32>
    %71 = vector.extract_strided_slice %50 {offsets = [0, 64], sizes = [2, 32], strides = [1, 1]} : vector<2x96xf32> to vector<2x32xf32>
    %72 = arith.addf %71, %14 : vector<2x32xf32>
    %73 = arith.mulf %59, %72 : vector<2x32xf32>
    %74 = arith.addf %70, %73 : vector<2x32xf32>
    %75 = math.tanh %74 : vector<2x32xf32>
    %cst_21 = arith.constant 1.000000e+00 : f32
    %76 = vector.broadcast %cst_21 : f32 to vector<2x32xf32>
    %77 = arith.subf %76, %68 : vector<2x32xf32>
    %78 = arith.mulf %77, %75 : vector<2x32xf32>
    %79 = arith.mulf %68, %46 : vector<2x32xf32>
    %80 = arith.addf %78, %79 : vector<2x32xf32>
    %c0_22 = arith.constant 0 : index
    %c1 = arith.constant 1 : index
    %c0_23 = arith.constant 0 : index
    %81 = vector.load %arg13[%c0_22, %c1, %c0_23] : memref<2x8x32xf32, #tpu.memory_space<vmem>>, vector<2x1x32xf32>
    %82 = vector.shape_cast %81 : vector<2x1x32xf32> to vector<2x32xf32>
    %83 = vector.shape_cast %80 : vector<2x32xf32> to vector<2x1x32xf32>
    tpu.vector_store %arg13[%c0_22, %c1, %c0_23], %83 {strides = array<i32>} : memref<2x8x32xf32, #tpu.memory_space<vmem>>, vector<2x1x32xf32>,
    %cst_24 = arith.constant dense<0.000000e+00> : vector<2x96xf32>
    %84 = tpu.matmul %80, %11, %cst_24 {dimension_numbers = #tpu.dot_dimension_numbers<[1], [0], [0], [1], [0, 0, 1, 1], [], []>} : vector<2x32xf32>, vector<32x96xf32>, vector<2x96xf32> -> vector<2x96xf32>
    %85 = vector.extract_strided_slice %8 {offsets = [0, 2, 0], sizes = [2, 1, 32], strides = [1, 1, 1]} : vector<2x8x32xf32> to vector<2x1x32xf32>
    %86 = vector.shape_cast %85 : vector<2x1x32xf32> to vector<2x32xf32>
    %87 = vector.extract_strided_slice %84 {offsets = [0, 0], sizes = [2, 32], strides = [1, 1]} : vector<2x96xf32> to vector<2x32xf32>
    %88 = arith.addf %86, %87 : vector<2x32xf32>
    %89 = arith.negf %88 : vector<2x32xf32>
    %90 = math.exp %89 : vector<2x32xf32>
    %cst_25 = arith.constant 1.000000e+00 : f32
    %91 = vector.broadcast %cst_25 : f32 to vector<2x32xf32>
    %92 = arith.addf %91, %90 : vector<2x32xf32>
    %93 = arith.divf %91, %92 : vector<2x32xf32>
    %94 = vector.extract_strided_slice %9 {offsets = [0, 2, 0], sizes = [2, 1, 32], strides = [1, 1, 1]} : vector<2x8x32xf32> to vector<2x1x32xf32>
    %95 = vector.shape_cast %94 : vector<2x1x32xf32> to vector<2x32xf32>
    %96 = vector.extract_strided_slice %84 {offsets = [0, 32], sizes = [2, 32], strides = [1, 1]} : vector<2x96xf32> to vector<2x32xf32>
    %97 = arith.addf %95, %96 : vector<2x32xf32>
    %98 = arith.negf %97 : vector<2x32xf32>
    %99 = math.exp %98 : vector<2x32xf32>
    %cst_26 = arith.constant 1.000000e+00 : f32
    %100 = vector.broadcast %cst_26 : f32 to vector<2x32xf32>
    %101 = arith.addf %100, %99 : vector<2x32xf32>
    %102 = arith.divf %100, %101 : vector<2x32xf32>
    %103 = vector.extract_strided_slice %10 {offsets = [0, 2, 0], sizes = [2, 1, 32], strides = [1, 1, 1]} : vector<2x8x32xf32> to vector<2x1x32xf32>
    %104 = vector.shape_cast %103 : vector<2x1x32xf32> to vector<2x32xf32>
    %105 = vector.extract_strided_slice %84 {offsets = [0, 64], sizes = [2, 32], strides = [1, 1]} : vector<2x96xf32> to vector<2x32xf32>
    %106 = arith.addf %105, %14 : vector<2x32xf32>
    %107 = arith.mulf %93, %106 : vector<2x32xf32>
    %108 = arith.addf %104, %107 : vector<2x32xf32>
    %109 = math.tanh %108 : vector<2x32xf32>
    %cst_27 = arith.constant 1.000000e+00 : f32
    %110 = vector.broadcast %cst_27 : f32 to vector<2x32xf32>
    %111 = arith.subf %110, %102 : vector<2x32xf32>
    %112 = arith.mulf %111, %109 : vector<2x32xf32>
    %113 = arith.mulf %102, %80 : vector<2x32xf32>
    %114 = arith.addf %112, %113 : vector<2x32xf32>
    %c0_28 = arith.constant 0 : index
    %c2 = arith.constant 2 : index
    %c0_29 = arith.constant 0 : index
    %115 = vector.load %arg13[%c0_28, %c2, %c0_29] : memref<2x8x32xf32, #tpu.memory_space<vmem>>, vector<2x1x32xf32>
    %116 = vector.shape_cast %115 : vector<2x1x32xf32> to vector<2x32xf32>
    %117 = vector.shape_cast %114 : vector<2x32xf32> to vector<2x1x32xf32>
    tpu.vector_store %arg13[%c0_28, %c2, %c0_29], %117 {strides = array<i32>} : memref<2x8x32xf32, #tpu.memory_space<vmem>>, vector<2x1x32xf32>,
    %cst_30 = arith.constant dense<0.000000e+00> : vector<2x96xf32>
    %118 = tpu.matmul %114, %11, %cst_30 {dimension_numbers = #tpu.dot_dimension_numbers<[1], [0], [0], [1], [0, 0, 1, 1], [], []>} : vector<2x32xf32>, vector<32x96xf32>, vector<2x96xf32> -> vector<2x96xf32>
    %119 = vector.extract_strided_slice %8 {offsets = [0, 3, 0], sizes = [2, 1, 32], strides = [1, 1, 1]} : vector<2x8x32xf32> to vector<2x1x32xf32>
    %120 = vector.shape_cast %119 : vector<2x1x32xf32> to vector<2x32xf32>
    %121 = vector.extract_strided_slice %118 {offsets = [0, 0], sizes = [2, 32], strides = [1, 1]} : vector<2x96xf32> to vector<2x32xf32>
    %122 = arith.addf %120, %121 : vector<2x32xf32>
    %123 = arith.negf %122 : vector<2x32xf32>
    %124 = math.exp %123 : vector<2x32xf32>
    %cst_31 = arith.constant 1.000000e+00 : f32
    %125 = vector.broadcast %cst_31 : f32 to vector<2x32xf32>
    %126 = arith.addf %125, %124 : vector<2x32xf32>
    %127 = arith.divf %125, %126 : vector<2x32xf32>
    %128 = vector.extract_strided_slice %9 {offsets = [0, 3, 0], sizes = [2, 1, 32], strides = [1, 1, 1]} : vector<2x8x32xf32> to vector<2x1x32xf32>
    %129 = vector.shape_cast %128 : vector<2x1x32xf32> to vector<2x32xf32>
    %130 = vector.extract_strided_slice %118 {offsets = [0, 32], sizes = [2, 32], strides = [1, 1]} : vector<2x96xf32> to vector<2x32xf32>
    %131 = arith.addf %129, %130 : vector<2x32xf32>
    %132 = arith.negf %131 : vector<2x32xf32>
    %133 = math.exp %132 : vector<2x32xf32>
    %cst_32 = arith.constant 1.000000e+00 : f32
    %134 = vector.broadcast %cst_32 : f32 to vector<2x32xf32>
    %135 = arith.addf %134, %133 : vector<2x32xf32>
    %136 = arith.divf %134, %135 : vector<2x32xf32>
    %137 = vector.extract_strided_slice %10 {offsets = [0, 3, 0], sizes = [2, 1, 32], strides = [1, 1, 1]} : vector<2x8x32xf32> to vector<2x1x32xf32>
    %138 = vector.shape_cast %137 : vector<2x1x32xf32> to vector<2x32xf32>
    %139 = vector.extract_strided_slice %118 {offsets = [0, 64], sizes = [2, 32], strides = [1, 1]} : vector<2x96xf32> to vector<2x32xf32>
    %140 = arith.addf %139, %14 : vector<2x32xf32>
    %141 = arith.mulf %127, %140 : vector<2x32xf32>
    %142 = arith.addf %138, %141 : vector<2x32xf32>
    %143 = math.tanh %142 : vector<2x32xf32>
    %cst_33 = arith.constant 1.000000e+00 : f32
    %144 = vector.broadcast %cst_33 : f32 to vector<2x32xf32>
    %145 = arith.subf %144, %136 : vector<2x32xf32>
    %146 = arith.mulf %145, %143 : vector<2x32xf32>
    %147 = arith.mulf %136, %114 : vector<2x32xf32>
    %148 = arith.addf %146, %147 : vector<2x32xf32>
    %c0_34 = arith.constant 0 : index
    %c3 = arith.constant 3 : index
    %c0_35 = arith.constant 0 : index
    %149 = vector.load %arg13[%c0_34, %c3, %c0_35] : memref<2x8x32xf32, #tpu.memory_space<vmem>>, vector<2x1x32xf32>
    %150 = vector.shape_cast %149 : vector<2x1x32xf32> to vector<2x32xf32>
    %151 = vector.shape_cast %148 : vector<2x32xf32> to vector<2x1x32xf32>
    tpu.vector_store %arg13[%c0_34, %c3, %c0_35], %151 {strides = array<i32>} : memref<2x8x32xf32, #tpu.memory_space<vmem>>, vector<2x1x32xf32>,
    %cst_36 = arith.constant dense<0.000000e+00> : vector<2x96xf32>
    %152 = tpu.matmul %148, %11, %cst_36 {dimension_numbers = #tpu.dot_dimension_numbers<[1], [0], [0], [1], [0, 0, 1, 1], [], []>} : vector<2x32xf32>, vector<32x96xf32>, vector<2x96xf32> -> vector<2x96xf32>
    %153 = vector.extract_strided_slice %8 {offsets = [0, 4, 0], sizes = [2, 1, 32], strides = [1, 1, 1]} : vector<2x8x32xf32> to vector<2x1x32xf32>
    %154 = vector.shape_cast %153 : vector<2x1x32xf32> to vector<2x32xf32>
    %155 = vector.extract_strided_slice %152 {offsets = [0, 0], sizes = [2, 32], strides = [1, 1]} : vector<2x96xf32> to vector<2x32xf32>
    %156 = arith.addf %154, %155 : vector<2x32xf32>
    %157 = arith.negf %156 : vector<2x32xf32>
    %158 = math.exp %157 : vector<2x32xf32>
    %cst_37 = arith.constant 1.000000e+00 : f32
    %159 = vector.broadcast %cst_37 : f32 to vector<2x32xf32>
    %160 = arith.addf %159, %158 : vector<2x32xf32>
    %161 = arith.divf %159, %160 : vector<2x32xf32>
    %162 = vector.extract_strided_slice %9 {offsets = [0, 4, 0], sizes = [2, 1, 32], strides = [1, 1, 1]} : vector<2x8x32xf32> to vector<2x1x32xf32>
    %163 = vector.shape_cast %162 : vector<2x1x32xf32> to vector<2x32xf32>
    %164 = vector.extract_strided_slice %152 {offsets = [0, 32], sizes = [2, 32], strides = [1, 1]} : vector<2x96xf32> to vector<2x32xf32>
    %165 = arith.addf %163, %164 : vector<2x32xf32>
    %166 = arith.negf %165 : vector<2x32xf32>
    %167 = math.exp %166 : vector<2x32xf32>
    %cst_38 = arith.constant 1.000000e+00 : f32
    %168 = vector.broadcast %cst_38 : f32 to vector<2x32xf32>
    %169 = arith.addf %168, %167 : vector<2x32xf32>
    %170 = arith.divf %168, %169 : vector<2x32xf32>
    %171 = vector.extract_strided_slice %10 {offsets = [0, 4, 0], sizes = [2, 1, 32], strides = [1, 1, 1]} : vector<2x8x32xf32> to vector<2x1x32xf32>
    %172 = vector.shape_cast %171 : vector<2x1x32xf32> to vector<2x32xf32>
    %173 = vector.extract_strided_slice %152 {offsets = [0, 64], sizes = [2, 32], strides = [1, 1]} : vector<2x96xf32> to vector<2x32xf32>
    %174 = arith.addf %173, %14 : vector<2x32xf32>
    %175 = arith.mulf %161, %174 : vector<2x32xf32>
    %176 = arith.addf %172, %175 : vector<2x32xf32>
    %177 = math.tanh %176 : vector<2x32xf32>
    %cst_39 = arith.constant 1.000000e+00 : f32
    %178 = vector.broadcast %cst_39 : f32 to vector<2x32xf32>
    %179 = arith.subf %178, %170 : vector<2x32xf32>
    %180 = arith.mulf %179, %177 : vector<2x32xf32>
    %181 = arith.mulf %170, %148 : vector<2x32xf32>
    %182 = arith.addf %180, %181 : vector<2x32xf32>
    %c0_40 = arith.constant 0 : index
    %c4 = arith.constant 4 : index
    %c0_41 = arith.constant 0 : index
    %183 = vector.load %arg13[%c0_40, %c4, %c0_41] : memref<2x8x32xf32, #tpu.memory_space<vmem>>, vector<2x1x32xf32>
    %184 = vector.shape_cast %183 : vector<2x1x32xf32> to vector<2x32xf32>
    %185 = vector.shape_cast %182 : vector<2x32xf32> to vector<2x1x32xf32>
    tpu.vector_store %arg13[%c0_40, %c4, %c0_41], %185 {strides = array<i32>} : memref<2x8x32xf32, #tpu.memory_space<vmem>>, vector<2x1x32xf32>,
    %cst_42 = arith.constant dense<0.000000e+00> : vector<2x96xf32>
    %186 = tpu.matmul %182, %11, %cst_42 {dimension_numbers = #tpu.dot_dimension_numbers<[1], [0], [0], [1], [0, 0, 1, 1], [], []>} : vector<2x32xf32>, vector<32x96xf32>, vector<2x96xf32> -> vector<2x96xf32>
    %187 = vector.extract_strided_slice %8 {offsets = [0, 5, 0], sizes = [2, 1, 32], strides = [1, 1, 1]} : vector<2x8x32xf32> to vector<2x1x32xf32>
    %188 = vector.shape_cast %187 : vector<2x1x32xf32> to vector<2x32xf32>
    %189 = vector.extract_strided_slice %186 {offsets = [0, 0], sizes = [2, 32], strides = [1, 1]} : vector<2x96xf32> to vector<2x32xf32>
    %190 = arith.addf %188, %189 : vector<2x32xf32>
    %191 = arith.negf %190 : vector<2x32xf32>
    %192 = math.exp %191 : vector<2x32xf32>
    %cst_43 = arith.constant 1.000000e+00 : f32
    %193 = vector.broadcast %cst_43 : f32 to vector<2x32xf32>
    %194 = arith.addf %193, %192 : vector<2x32xf32>
    %195 = arith.divf %193, %194 : vector<2x32xf32>
    %196 = vector.extract_strided_slice %9 {offsets = [0, 5, 0], sizes = [2, 1, 32], strides = [1, 1, 1]} : vector<2x8x32xf32> to vector<2x1x32xf32>
    %197 = vector.shape_cast %196 : vector<2x1x32xf32> to vector<2x32xf32>
    %198 = vector.extract_strided_slice %186 {offsets = [0, 32], sizes = [2, 32], strides = [1, 1]} : vector<2x96xf32> to vector<2x32xf32>
    %199 = arith.addf %197, %198 : vector<2x32xf32>
    %200 = arith.negf %199 : vector<2x32xf32>
    %201 = math.exp %200 : vector<2x32xf32>
    %cst_44 = arith.constant 1.000000e+00 : f32
    %202 = vector.broadcast %cst_44 : f32 to vector<2x32xf32>
    %203 = arith.addf %202, %201 : vector<2x32xf32>
    %204 = arith.divf %202, %203 : vector<2x32xf32>
    %205 = vector.extract_strided_slice %10 {offsets = [0, 5, 0], sizes = [2, 1, 32], strides = [1, 1, 1]} : vector<2x8x32xf32> to vector<2x1x32xf32>
    %206 = vector.shape_cast %205 : vector<2x1x32xf32> to vector<2x32xf32>
    %207 = vector.extract_strided_slice %186 {offsets = [0, 64], sizes = [2, 32], strides = [1, 1]} : vector<2x96xf32> to vector<2x32xf32>
    %208 = arith.addf %207, %14 : vector<2x32xf32>
    %209 = arith.mulf %195, %208 : vector<2x32xf32>
    %210 = arith.addf %206, %209 : vector<2x32xf32>
    %211 = math.tanh %210 : vector<2x32xf32>
    %cst_45 = arith.constant 1.000000e+00 : f32
    %212 = vector.broadcast %cst_45 : f32 to vector<2x32xf32>
    %213 = arith.subf %212, %204 : vector<2x32xf32>
    %214 = arith.mulf %213, %211 : vector<2x32xf32>
    %215 = arith.mulf %204, %182 : vector<2x32xf32>
    %216 = arith.addf %214, %215 : vector<2x32xf32>
    %c0_46 = arith.constant 0 : index
    %c5 = arith.constant 5 : index
    %c0_47 = arith.constant 0 : index
    %217 = vector.load %arg13[%c0_46, %c5, %c0_47] : memref<2x8x32xf32, #tpu.memory_space<vmem>>, vector<2x1x32xf32>
    %218 = vector.shape_cast %217 : vector<2x1x32xf32> to vector<2x32xf32>
    %219 = vector.shape_cast %216 : vector<2x32xf32> to vector<2x1x32xf32>
    tpu.vector_store %arg13[%c0_46, %c5, %c0_47], %219 {strides = array<i32>} : memref<2x8x32xf32, #tpu.memory_space<vmem>>, vector<2x1x32xf32>,
    %cst_48 = arith.constant dense<0.000000e+00> : vector<2x96xf32>
    %220 = tpu.matmul %216, %11, %cst_48 {dimension_numbers = #tpu.dot_dimension_numbers<[1], [0], [0], [1], [0, 0, 1, 1], [], []>} : vector<2x32xf32>, vector<32x96xf32>, vector<2x96xf32> -> vector<2x96xf32>
    %221 = vector.extract_strided_slice %8 {offsets = [0, 6, 0], sizes = [2, 1, 32], strides = [1, 1, 1]} : vector<2x8x32xf32> to vector<2x1x32xf32>
    %222 = vector.shape_cast %221 : vector<2x1x32xf32> to vector<2x32xf32>
    %223 = vector.extract_strided_slice %220 {offsets = [0, 0], sizes = [2, 32], strides = [1, 1]} : vector<2x96xf32> to vector<2x32xf32>
    %224 = arith.addf %222, %223 : vector<2x32xf32>
    %225 = arith.negf %224 : vector<2x32xf32>
    %226 = math.exp %225 : vector<2x32xf32>
    %cst_49 = arith.constant 1.000000e+00 : f32
    %227 = vector.broadcast %cst_49 : f32 to vector<2x32xf32>
    %228 = arith.addf %227, %226 : vector<2x32xf32>
    %229 = arith.divf %227, %228 : vector<2x32xf32>
    %230 = vector.extract_strided_slice %9 {offsets = [0, 6, 0], sizes = [2, 1, 32], strides = [1, 1, 1]} : vector<2x8x32xf32> to vector<2x1x32xf32>
    %231 = vector.shape_cast %230 : vector<2x1x32xf32> to vector<2x32xf32>
    %232 = vector.extract_strided_slice %220 {offsets = [0, 32], sizes = [2, 32], strides = [1, 1]} : vector<2x96xf32> to vector<2x32xf32>
    %233 = arith.addf %231, %232 : vector<2x32xf32>
    %234 = arith.negf %233 : vector<2x32xf32>
    %235 = math.exp %234 : vector<2x32xf32>
    %cst_50 = arith.constant 1.000000e+00 : f32
    %236 = vector.broadcast %cst_50 : f32 to vector<2x32xf32>
    %237 = arith.addf %236, %235 : vector<2x32xf32>
    %238 = arith.divf %236, %237 : vector<2x32xf32>
    %239 = vector.extract_strided_slice %10 {offsets = [0, 6, 0], sizes = [2, 1, 32], strides = [1, 1, 1]} : vector<2x8x32xf32> to vector<2x1x32xf32>
    %240 = vector.shape_cast %239 : vector<2x1x32xf32> to vector<2x32xf32>
    %241 = vector.extract_strided_slice %220 {offsets = [0, 64], sizes = [2, 32], strides = [1, 1]} : vector<2x96xf32> to vector<2x32xf32>
    %242 = arith.addf %241, %14 : vector<2x32xf32>
    %243 = arith.mulf %229, %242 : vector<2x32xf32>
    %244 = arith.addf %240, %243 : vector<2x32xf32>
    %245 = math.tanh %244 : vector<2x32xf32>
    %cst_51 = arith.constant 1.000000e+00 : f32
    %246 = vector.broadcast %cst_51 : f32 to vector<2x32xf32>
    %247 = arith.subf %246, %238 : vector<2x32xf32>
    %248 = arith.mulf %247, %245 : vector<2x32xf32>
    %249 = arith.mulf %238, %216 : vector<2x32xf32>
    %250 = arith.addf %248, %249 : vector<2x32xf32>
    %c0_52 = arith.constant 0 : index
    %c6 = arith.constant 6 : index
    %c0_53 = arith.constant 0 : index
    %251 = vector.load %arg13[%c0_52, %c6, %c0_53] : memref<2x8x32xf32, #tpu.memory_space<vmem>>, vector<2x1x32xf32>
    %252 = vector.shape_cast %251 : vector<2x1x32xf32> to vector<2x32xf32>
    %253 = vector.shape_cast %250 : vector<2x32xf32> to vector<2x1x32xf32>
    tpu.vector_store %arg13[%c0_52, %c6, %c0_53], %253 {strides = array<i32>} : memref<2x8x32xf32, #tpu.memory_space<vmem>>, vector<2x1x32xf32>,
    %cst_54 = arith.constant dense<0.000000e+00> : vector<2x96xf32>
    %254 = tpu.matmul %250, %11, %cst_54 {dimension_numbers = #tpu.dot_dimension_numbers<[1], [0], [0], [1], [0, 0, 1, 1], [], []>} : vector<2x32xf32>, vector<32x96xf32>, vector<2x96xf32> -> vector<2x96xf32>
    %255 = vector.extract_strided_slice %8 {offsets = [0, 7, 0], sizes = [2, 1, 32], strides = [1, 1, 1]} : vector<2x8x32xf32> to vector<2x1x32xf32>
    %256 = vector.shape_cast %255 : vector<2x1x32xf32> to vector<2x32xf32>
    %257 = vector.extract_strided_slice %254 {offsets = [0, 0], sizes = [2, 32], strides = [1, 1]} : vector<2x96xf32> to vector<2x32xf32>
    %258 = arith.addf %256, %257 : vector<2x32xf32>
    %259 = arith.negf %258 : vector<2x32xf32>
    %260 = math.exp %259 : vector<2x32xf32>
    %cst_55 = arith.constant 1.000000e+00 : f32
    %261 = vector.broadcast %cst_55 : f32 to vector<2x32xf32>
    %262 = arith.addf %261, %260 : vector<2x32xf32>
    %263 = arith.divf %261, %262 : vector<2x32xf32>
    %264 = vector.extract_strided_slice %9 {offsets = [0, 7, 0], sizes = [2, 1, 32], strides = [1, 1, 1]} : vector<2x8x32xf32> to vector<2x1x32xf32>
    %265 = vector.shape_cast %264 : vector<2x1x32xf32> to vector<2x32xf32>
    %266 = vector.extract_strided_slice %254 {offsets = [0, 32], sizes = [2, 32], strides = [1, 1]} : vector<2x96xf32> to vector<2x32xf32>
    %267 = arith.addf %265, %266 : vector<2x32xf32>
    %268 = arith.negf %267 : vector<2x32xf32>
    %269 = math.exp %268 : vector<2x32xf32>
    %cst_56 = arith.constant 1.000000e+00 : f32
    %270 = vector.broadcast %cst_56 : f32 to vector<2x32xf32>
    %271 = arith.addf %270, %269 : vector<2x32xf32>
    %272 = arith.divf %270, %271 : vector<2x32xf32>
    %273 = vector.extract_strided_slice %10 {offsets = [0, 7, 0], sizes = [2, 1, 32], strides = [1, 1, 1]} : vector<2x8x32xf32> to vector<2x1x32xf32>
    %274 = vector.shape_cast %273 : vector<2x1x32xf32> to vector<2x32xf32>
    %275 = vector.extract_strided_slice %254 {offsets = [0, 64], sizes = [2, 32], strides = [1, 1]} : vector<2x96xf32> to vector<2x32xf32>
    %276 = arith.addf %275, %14 : vector<2x32xf32>
    %277 = arith.mulf %263, %276 : vector<2x32xf32>
    %278 = arith.addf %274, %277 : vector<2x32xf32>
    %279 = math.tanh %278 : vector<2x32xf32>
    %cst_57 = arith.constant 1.000000e+00 : f32
    %280 = vector.broadcast %cst_57 : f32 to vector<2x32xf32>
    %281 = arith.subf %280, %272 : vector<2x32xf32>
    %282 = arith.mulf %281, %279 : vector<2x32xf32>
    %283 = arith.mulf %272, %250 : vector<2x32xf32>
    %284 = arith.addf %282, %283 : vector<2x32xf32>
    %c0_58 = arith.constant 0 : index
    %c7 = arith.constant 7 : index
    %c0_59 = arith.constant 0 : index
    %285 = vector.load %arg13[%c0_58, %c7, %c0_59] : memref<2x8x32xf32, #tpu.memory_space<vmem>>, vector<2x1x32xf32>
    %286 = vector.shape_cast %285 : vector<2x1x32xf32> to vector<2x32xf32>
    %287 = vector.shape_cast %284 : vector<2x32xf32> to vector<2x1x32xf32>
    tpu.vector_store %arg13[%c0_58, %c7, %c0_59], %287 {strides = array<i32>} : memref<2x8x32xf32, #tpu.memory_space<vmem>>, vector<2x1x32xf32>,
    %c0_60 = arith.constant 0 : index
    %c0_61 = arith.constant 0 : index
    %c0_62 = arith.constant 0 : index
    %288 = vector.load %arg13[%c0_60, %c0_61, %c0_62] : memref<2x8x32xf32, #tpu.memory_space<vmem>>, vector<2x8x32xf32>
    %289 = vector.shape_cast %288 : vector<2x8x32xf32> to vector<16x32xf32>
    %c0_63 = arith.constant 0 : index
    %c0_64 = arith.constant 0 : index
    %290 = vector.load %arg6[%c0_63, %c0_64] : memref<32x32xf32, #tpu.memory_space<vmem>>, vector<32x32xf32>
    %cst_65 = arith.constant dense<0.000000e+00> : vector<16x32xf32>
    %291 = tpu.matmul %289, %290, %cst_65 {dimension_numbers = #tpu.dot_dimension_numbers<[1], [0], [0], [1], [0, 0, 1, 1], [], []>} : vector<16x32xf32>, vector<32x32xf32>, vector<16x32xf32> -> vector<16x32xf32>
    %c0_66 = arith.constant 0 : index
    %c0_67 = arith.constant 0 : index
    %292 = vector.load %arg7[%c0_66, %c0_67] : memref<1x32xf32, #tpu.memory_space<vmem>>, vector<1x32xf32>
    %293 = vector.broadcast %292 : vector<1x32xf32> to vector<16x32xf32>
    %294 = arith.addf %291, %293 : vector<16x32xf32>
    %cst_68 = arith.constant 0.000000e+00 : f32
    %295 = vector.broadcast %cst_68 : f32 to vector<16x32xf32>
    %296 = arith.maximumf %294, %295 : vector<16x32xf32>
    %c0_69 = arith.constant 0 : index
    %c0_70 = arith.constant 0 : index
    %297 = vector.load %arg8[%c0_69, %c0_70] : memref<32x32xf32, #tpu.memory_space<vmem>>, vector<32x32xf32>
    %cst_71 = arith.constant dense<0.000000e+00> : vector<16x32xf32>
    %298 = tpu.matmul %296, %297, %cst_71 {dimension_numbers = #tpu.dot_dimension_numbers<[1], [0], [0], [1], [0, 0, 1, 1], [], []>} : vector<16x32xf32>, vector<32x32xf32>, vector<16x32xf32> -> vector<16x32xf32>
    %c0_72 = arith.constant 0 : index
    %c0_73 = arith.constant 0 : index
    %299 = vector.load %arg9[%c0_72, %c0_73] : memref<1x32xf32, #tpu.memory_space<vmem>>, vector<1x32xf32>
    %300 = vector.broadcast %299 : vector<1x32xf32> to vector<16x32xf32>
    %301 = arith.addf %298, %300 : vector<16x32xf32>
    %cst_74 = arith.constant 0.000000e+00 : f32
    %302 = vector.broadcast %cst_74 : f32 to vector<16x32xf32>
    %303 = arith.maximumf %301, %302 : vector<16x32xf32>
    %c0_75 = arith.constant 0 : index
    %c0_76 = arith.constant 0 : index
    %304 = vector.load %arg10[%c0_75, %c0_76] : memref<32x32xf32, #tpu.memory_space<vmem>>, vector<32x32xf32>
    %cst_77 = arith.constant dense<0.000000e+00> : vector<16x32xf32>
    %305 = tpu.matmul %303, %304, %cst_77 {dimension_numbers = #tpu.dot_dimension_numbers<[1], [0], [0], [1], [0, 0, 1, 1], [], []>} : vector<16x32xf32>, vector<32x32xf32>, vector<16x32xf32> -> vector<16x32xf32>
    %c0_78 = arith.constant 0 : index
    %c0_79 = arith.constant 0 : index
    %306 = vector.load %arg11[%c0_78, %c0_79] : memref<1x32xf32, #tpu.memory_space<vmem>>, vector<1x32xf32>
    %307 = vector.broadcast %306 : vector<1x32xf32> to vector<16x32xf32>
    %308 = arith.addf %305, %307 : vector<16x32xf32>
    %309 = tpu.iota {dimensions = array<i32: 1>} : vector<16x32xi32>
    %c16_i32 = arith.constant 16 : i32
    %310 = vector.broadcast %c16_i32 : i32 to vector<16x32xi32>
    %311 = arith.cmpi slt, %309, %310 : vector<16x32xi32>
    %cst_80 = arith.constant 0.000000e+00 : f32
    %312 = vector.broadcast %cst_80 : f32 to vector<16x32xf32>
    %313 = arith.maximumf %308, %312 : vector<16x32xf32>
    %314 = vector.broadcast %cst_80 : f32 to vector<16x32xf32>
    %315 = arith.subf %308, %314 : vector<16x32xf32>
    %316 = arith.cmpf one, %315, %315 : vector<16x32xf32>
    %317 = vector.broadcast %cst_80 : f32 to vector<16x32xf32>
    %318 = arith.addf %308, %317 : vector<16x32xf32>
    %319 = math.absf %315 : vector<16x32xf32>
    %cst_81 = arith.constant 0.000000e+00 : f32
    %320 = vector.broadcast %cst_81 : f32 to vector<16x32xf32>
    %321 = arith.subf %320, %319 : vector<16x32xf32>
    %322 = math.exp %321 : vector<16x32xf32>
    %323 = math.log1p %322 : vector<16x32xf32>
    %324 = arith.addf %313, %323 : vector<16x32xf32>
    %325 = arith.select %316, %318, %324 : vector<16x32xi1>, vector<16x32xf32>
    %326 = arith.select %311, %308, %325 : vector<16x32xi1>, vector<16x32xf32>
    %c0_82 = arith.constant 0 : index
    %c0_83 = arith.constant 0 : index
    %327 = vector.load %arg12[%c0_82, %c0_83] : memref<16x32xf32, #tpu.memory_space<vmem>>, vector<16x32xf32>
    tpu.vector_store %arg12[%c0_82, %c0_83], %326 {strides = array<i32>} : memref<16x32xf32, #tpu.memory_space<vmem>>, vector<16x32xf32>,
    return
  }
  func.func @transform_0(%arg0: i32) -> (i32, i32, i32) {
    %c0_i32 = arith.constant 0 : i32
    %c0_i32_0 = arith.constant 0 : i32
    %c0_i32_1 = arith.constant 0 : i32
    %c0_i32_2 = arith.constant 0 : i32
    return %c0_i32, %c0_i32_0, %c0_i32_1 : i32, i32, i32
  }
  func.func @transform_1(%arg0: i32) -> (i32, i32) {
    %c0_i32 = arith.constant 0 : i32
    %c0_i32_0 = arith.constant 0 : i32
    %c0_i32_1 = arith.constant 0 : i32
    return %c0_i32, %c0_i32_0 : i32, i32
  }
  func.func @transform_2(%arg0: i32) -> (i32, i32) {
    %c0_i32 = arith.constant 0 : i32
    %c0_i32_0 = arith.constant 0 : i32
    %c0_i32_1 = arith.constant 0 : i32
    return %c0_i32, %c0_i32_0 : i32, i32
  }
  func.func @transform_3(%arg0: i32) -> (i32, i32) {
    %c0_i32 = arith.constant 0 : i32
    %c0_i32_0 = arith.constant 0 : i32
    %c0_i32_1 = arith.constant 0 : i32
    return %c0_i32, %c0_i32_0 : i32, i32
  }
  func.func @transform_4(%arg0: i32) -> (i32, i32) {
    %c0_i32 = arith.constant 0 : i32
    %c0_i32_0 = arith.constant 0 : i32
    %c0_i32_1 = arith.constant 0 : i32
    return %c0_i32, %c0_i32_0 : i32, i32
  }
  func.func @transform_5(%arg0: i32) -> (i32, i32) {
    %c0_i32 = arith.constant 0 : i32
    %c0_i32_0 = arith.constant 0 : i32
    %c0_i32_1 = arith.constant 0 : i32
    return %c0_i32, %c0_i32_0 : i32, i32
  }
  func.func @transform_6(%arg0: i32) -> (i32, i32) {
    %c0_i32 = arith.constant 0 : i32
    %c0_i32_0 = arith.constant 0 : i32
    %c0_i32_1 = arith.constant 0 : i32
    return %c0_i32, %c0_i32_0 : i32, i32
  }
  func.func @transform_7(%arg0: i32) -> (i32, i32) {
    %c0_i32 = arith.constant 0 : i32
    %c0_i32_0 = arith.constant 0 : i32
    %c0_i32_1 = arith.constant 0 : i32
    return %c0_i32, %c0_i32_0 : i32, i32
  }
  func.func @transform_8(%arg0: i32) -> (i32, i32) {
    %c0_i32 = arith.constant 0 : i32
    %c0_i32_0 = arith.constant 0 : i32
    %c0_i32_1 = arith.constant 0 : i32
    return %c0_i32, %c0_i32_0 : i32, i32
  }
  func.func @transform_9(%arg0: i32) -> (i32, i32) {
    %c0_i32 = arith.constant 0 : i32
    %c0_i32_0 = arith.constant 0 : i32
    %c0_i32_1 = arith.constant 0 : i32
    return %c0_i32, %c0_i32_0 : i32, i32
  }
  func.func @transform_10(%arg0: i32) -> (i32, i32) {
    %c0_i32 = arith.constant 0 : i32
    %c0_i32_0 = arith.constant 0 : i32
    %c0_i32_1 = arith.constant 0 : i32
    return %c0_i32, %c0_i32_0 : i32, i32
  }
  func.func @transform_11(%arg0: i32) -> (i32, i32) {
    %c0_i32 = arith.constant 0 : i32
    %c0_i32_0 = arith.constant 0 : i32
    %c0_i32_1 = arith.constant 0 : i32
    return %c0_i32, %c0_i32_0 : i32, i32
  }
}

</mosaic_0001>

<bundles_post_ra>
// kernel: decoder_forward.1
= control target key start
LH: loop header
LB: loop body
LE: loop exit
PB: predicated region body
PF: predicated region fallthrough
CT: control target
= control target key end

     0   :  { %vm55_vm0 = vcmask 1043456   ;;  %v2003_v0 = vmov 0.0   ;;  %vm48_vm1 = vcmask 31744   ;;  %vm2004_vm2 = vmmov 0   ;;  %s2005_s12 = smov 64   ;;  %s2459_s2 = inlined_call_operand.vmem [shape: f32[32,96], index: 2, kind: input, shape index: {}]   ;;  %s2460_s1 = inlined_call_operand.vmem [shape: f32[4,96], index: 1, kind: input, shape index: {}]   ;;  %s2461_s0 = inlined_call_operand.vmem [shape: f32[2,8,4], index: 0, kind: input, shape index: {}]   ;;  %s2462_s4 = inlined_call_operand.vmem [shape: f32[1,32], index: 4, kind: input, shape index: {}]   ;;  %s2463_s3 = inlined_call_operand.vmem [shape: f32[1,96], index: 3, kind: input, shape index: {}]   ;;  %s2464_s5 = inlined_call_operand.vmem [shape: f32[32,32], index: 5, kind: input, shape index: {}]   ;;  %s2465_s7 = inlined_call_operand.vmem [shape: f32[32,32], index: 7, kind: input, shape index: {}]   ;;  %s2466_s6 = inlined_call_operand.vmem [shape: f32[1,32], index: 6, kind: input, shape index: {}]   ;;  %s2467_s9 = inlined_call_operand.vmem [shape: f32[32,32], index: 9, kind: input, shape index: {}]   ;;  %s2468_s8 = inlined_call_operand.vmem [shape: f32[1,32], index: 8, kind: input, shape index: {}]   ;;  %s2469_s10 = inlined_call_operand.vmem [shape: f32[1,32], index: 10, kind: input, shape index: {}]   ;;  %s2470_s11 = inlined_call_operand.vmem [shape: f32[16,32], index: 11, kind: output, shape index: {}]  }
   0x1   :  { %1774 = vmatprep.subr.mxu1 %v2003_v0  ;;  %v2071_v1 = vld [vmem:[%s2459_s2 + $0x18] sm:$0xff]  ;;  %v40_v2 = vld [vmem:[%s2460_s1] sm:$0xf]  ;;  %1782 = vmatprep.mubr.msk.f32.mxu1 %vm2004_vm2, %v2003_v0  ;;  %v39_v4 = vld [vmem:[%s2461_s0 + $0x8] sm:$0xff]  ;;  %vm290_vm3 = vcmask 1041409   ;;  %vm144_vm4 = vcmask 261120  }
   0x2   :  { %v38_v3 = vld [vmem:[%s2461_s0] sm:$0xff]  ;;  %1775 = vmatpush3.msra.mxu1 %v2071_v1  ;;  %1769 = vmatprep.subr.msk.mxu0 %vm55_vm0, %v40_v2  ;;  %v2089_v5 = vld [vmem:[%s2459_s2 + $0x10] sm:$0xff]  ;;  %v2096_v6 = vld [vmem:[%s2459_s2 + $0x8] sm:$0xff]  ;;  %vm434_vm5 = vcmask 254977   ;;  %vm286_vm6 = vcmask 253952   ;;  %vm735_vm7 = vcmask 257027  }
   0x3   :  { %1776 = vmatprep.subr.mxu1 %v2003_v0  ;;  %1770 = vmatpush3.msk.msra.mxu0 %vm55_vm0, %v40_v2  ;;  %v1675_v7 = vld [vmem:[%s2462_s4] ss:$0 sm:$0xff]  ;;  %vm584_vm8 = vcmask 256002   ;;  %vm1037_vm9 = vcmask 259077   ;;  %vm886_vm10 = vcmask 258052   ;;  %vm1188_vm11 = vcmask 260102  }
   0x4   :  { %1771 = vmatprep.mubr.msk.f32.mxu0 %vm48_vm1, %v38_v3  ;;  %1777 = vmatpush3.msra.mxu1 %v2089_v5  ;;  %v2106_v8 = vld [vmem:[%s2459_s2] sm:$0xff]  ;;  %vm1339_vm12 = vcmask 261127  }
   0x5   :  { %1772 = vmatmul.mubr.msk.f32.vlgmr.msra.gmra.mxu0 %vm48_vm1, %v39_v4  ;;  %1778 = vmatprep.subr.mxu1 %v2003_v0  ;;  %v1671_v15 = vld [vmem:[%s2463_s3] ss:$0 sm:$0xff]  ;;  %s2006_s3 = smov 96  }
   0x6   :  { %1779 = vmatpush3.msra.mxu1 %v2096_v6  ;;  %236 = vrot.lane.b32.xlu0 %v1675_v7, %s2005_s12 }
   0x7   :  { %1780 = vmatprep.subr.mxu1 %v2003_v0  ;;  %1785 = vmatprep.subr.mxu0 %v2003_v0 }
   0x8   :  { %1781 = vmatpush3.msra.mxu1 %v2106_v8  ;;  %1786 = vmatpush3.msra.mxu0 %v2071_v1 }
   0x9   :  { %1783 = vmatmul.mubr.f32.vlgmr.msra.gmra.mxu1 %v2003_v0  ;;  %1787 = vmatprep.subr.mxu0 %v2003_v0 }
   0xa   :  { %1788 = vmatpush3.msra.mxu0 %v2089_v5  ;;  %1793 = vmatprep.mubr.msk.f32.mxu0 %vm2004_vm2, %v2003_v0 }
   0xb   :  { %1789 = vmatprep.subr.mxu0 %v2003_v0  ;;  %1796 = vmatprep.subr.mxu1 %v2003_v0 }
   0xc   :  { %1790 = vmatpush3.msra.mxu0 %v2096_v6  ;;  %1797 = vmatpush3.msra.mxu1 %v2071_v1 }
   0xd   :  { %1791 = vmatprep.subr.mxu0 %v2003_v0  ;;  %1798 = vmatprep.subr.mxu1 %v2003_v0 }
   0xe   :  { %1792 = vmatpush3.msra.mxu0 %v2106_v8  ;;  %1799 = vmatpush3.msra.mxu1 %v2089_v5 }
   0xf   :  { %1800 = vmatprep.subr.mxu1 %v2003_v0  ;;  %1804 = vmatprep.mubr.msk.f32.mxu1 %vm2004_vm2, %v2003_v0 }
  0x10   :  { %1801 = vmatpush3.msra.mxu1 %v2096_v6  ;;  %1807 = vmatprep.subr.mxu0 %v2003_v0 }
  0x11   :  { %1802 = vmatprep.subr.mxu1 %v2003_v0 }
  0x12   :  { %1803 = vmatpush3.msra.mxu1 %v2106_v8 }
  0x13   :  { %1818 = vmatprep.subr.mxu1 %v2003_v0 }
  0x78   :  { %v2135_v9 = vpop.permute.xlu0 %236 }
  0xc5   :  { %v1773_v14 = vpop.f32.mrf.mxu0 }
  0xc6   :  { %v2145_v18 = vadd.f32 %v1773_v14, %v1671_v15 }
  0xc7   :  { %v125_v16 = vpop.f32.mrf.mxu0 }
  0xc8   :  { %v2143_v17 = vadd.f32 %v1671_v15, %v125_v16 }
  0xc9   :  { %v214_v10 = vpop.f32.mrf.mxu1 }
  0xca   :  { %v239_v11 = vadd.f32 %v2135_v9, %v214_v10  ;;  %v219_v19 = vrot.slane %v214_v10, 1  ;;  %v222_v20 = vadd.f32 %v214_v10, %v2143_v17 }
  0xcb   :  { %v1784_v12 = vpop.f32.mrf.mxu1 }
  0xcc   :  { %242 = vrot.lane.b32.xlu1 %v239_v11, %s2005_s12  ;;  %v241_v13 = vrot.slane %v239_v11, 1  ;;  %v223_v21 = vadd.f32 %v219_v19, %v2145_v18  ;;  %v1676_v22 = vmul.f32 -1.442695, %v222_v20 }
  0xce   :  { %244 = vrot.lane.b32.xlu0 %v241_v13, %s2005_s12  ;;  %v1677_v23 = vmul.f32 -1.442695, %v223_v21  ;;  %1899 = vpow2.f32 %v1676_v22 }
  0xd0   :  { %1901 = vpow2.f32 %v1677_v23 }
  0xdb   :  { %v1900_v24 = vpop.eup %1899 }
  0xdc   :  { %v230_v26 = vadd.f32 1.0, %v1900_v24 }
  0xdd   :  { %v1902_v25 = vpop.eup %1901 }
  0xde   :  { %v231_v27 = vadd.f32 1.0, %v1902_v25  ;;  %1903 = vrcp.f32 %v230_v26 }
  0xe0   :  { %1905 = vrcp.f32 %v231_v27 }
  0xeb   :  { %v1904_v28 = vpop.eup %1903 }
  0xec   :  { %v262_v41 = vsub.f32 1.0, %v1904_v28  ;;  %v274_v47 = vmul.f32 0.0, %v1904_v28 }
  0xed   :  { %v1906_v31 = vpop.eup %1905 }
  0xee   :  { %v263_v42 = vsub.f32 1.0, %v1906_v31  ;;  %v275_v45 = vmul.f32 0.0, %v1906_v31 }
 0x13e   :  { %v243_v29 = vpop.permute.xlu1 %242 }
 0x13f   :  { %v248_v30 = vmul.f32 %v1904_v28, %v243_v29 }
 0x140   :  { %v245_v32 = vpop.permute.xlu0 %244 }
 0x141   :  { %v249_v33 = vmul.f32 %v1906_v31, %v245_v32  ;;  %252 = vrot.lane.b32.xlu0 %v248_v30, %s2005_s12 }
 0x143   :  { %254 = vrot.lane.b32.xlu1 %v249_v33, %s2005_s12 }
 0x1b3   :  { %v253_v34 = vpop.permute.xlu0 %252 }
 0x1b4   :  { %v258_v35 = vadd.f32 %v253_v34, %v2143_v17 }
 0x1b5   :  { %v255_v36 = vpop.permute.xlu1 %254 }
 0x1b6   :  { %1907 = vtanh.f32 %v258_v35  ;;  %v259_v37 = vadd.f32 %v255_v36, %v2145_v18 }
 0x1b8   :  { %1909 = vtanh.f32 %v259_v37 }
 0x1c3   :  { %v1908_v38 = vpop.eup %1907 }
 0x1c4   :  { %266 = vrot.lane.b32.xlu0 %v1908_v38, %s2006_s3 }
 0x1c5   :  { %v1910_v39 = vpop.eup %1909 }
 0x1c6   :  { %268 = vrot.lane.b32.xlu1 %v1910_v39, %s2006_s3 }
 0x236   :  { %v267_v40 = vpop.permute.xlu0 %266 }
 0x237   :  { %v272_v44 = vmul.f32 %v267_v40, %v262_v41 }
 0x238   :  { %v269_v43 = vpop.permute.xlu1 %268 }
 0x239   :  { %v273_v46 = vmul.f32 %v269_v43, %v263_v42  ;;  %v2157_v49 = vadd.f32 %v274_v47, %v272_v44 }
 0x23b   :  { %v2155_v48 = vadd.f32 %v275_v45, %v273_v46  ;;  %v419_v25 = vrot.slane %v2157_v49, 7 }
 0x23d   :  { %v289_v50 = vrot.slane %v2155_v48, 7 }
 0x23f   :  { %v291_v51 = vsel %vm290_vm3, %v289_v50, %v2157_v49 }
 0x240   :  { %292 = vrot.lane.b32.xlu1 %v291_v51, %s2006_s3 }
 0x2b2   :  { %v293_v52 = vpop.permute.xlu1 %292 }
 0x2b3   :  { %1794 = vmatmul.mubr.msk.f32.vlgmr.msra.gmra.mxu0 %vm144_vm4, %v293_v52 }
 0x2b4   :  { %1808 = vmatpush3.msra.mxu0 %v2071_v1  ;;  %1815 = vmatprep.mubr.msk.f32.mxu0 %vm2004_vm2, %v2003_v0 }
 0x2b5   :  { %1809 = vmatprep.subr.mxu0 %v2003_v0 }
 0x2b6   :  { %1810 = vmatpush3.msra.mxu0 %v2089_v5 }
 0x2b7   :  { %1811 = vmatprep.subr.mxu0 %v2003_v0 }
 0x2b8   :  { %1812 = vmatpush3.msra.mxu0 %v2096_v6 }
 0x2b9   :  { %1813 = vmatprep.subr.mxu0 %v2003_v0 }
 0x2ba   :  { %1814 = vmatpush3.msra.mxu0 %v2106_v8 }
 0x2bb   :  { %1829 = vmatprep.subr.mxu0 %v2003_v0 }
 0x373   :  { %v362_v53 = vpop.f32.mrf.mxu0 }
 0x374   :  { %v384_v54 = vadd.f32 %v362_v53, %v2135_v9  ;;  %v367_v57 = vrot.slane %v362_v53, 7  ;;  %v371_v58 = vadd.f32 %v362_v53, %v2145_v18 }
 0x375   :  { %v1795_v55 = vpop.f32.mrf.mxu0 }
 0x376   :  { %389 = vrot.lane.b32.xlu1 %v384_v54, %s2005_s12  ;;  %v386_v56 = vrot.slane %v384_v54, 7  ;;  %v370_v59 = vadd.f32 %v367_v57, %v2143_v17  ;;  %v1680_v60 = vmul.f32 -1.442695, %v371_v58 }
 0x378   :  { %387 = vrot.lane.b32.xlu0 %v386_v56, %s2005_s12  ;;  %v1679_v61 = vmul.f32 -1.442695, %v370_v59  ;;  %1911 = vpow2.f32 %v1680_v60 }
 0x37a   :  { %1913 = vpow2.f32 %v1679_v61 }
 0x385   :  { %v1912_v62 = vpop.eup %1911 }
 0x386   :  { %v379_v2 = vadd.f32 1.0, %v1912_v62 }
 0x387   :  { %v1914_v63 = vpop.eup %1913 }
 0x388   :  { %v378_v3 = vadd.f32 1.0, %v1914_v63  ;;  %1915 = vrcp.f32 %v379_v2 }
 0x38a   :  { %1917 = vrcp.f32 %v378_v3 }
 0x395   :  { %v1916_v4 = vpop.eup %1915 }
 0x396   :  { %v408_v23 = vsub.f32 1.0, %v1916_v4  ;;  %v423_v30 = vmul.f32 %v1916_v4, %v289_v50 }
 0x397   :  { %v1918_v11 = vpop.eup %1917 }
 0x398   :  { %v407_v24 = vsub.f32 1.0, %v1918_v11  ;;  %v422_v28 = vmul.f32 %v1918_v11, %v419_v25 }
 0x3e8   :  { %v390_v7 = vpop.permute.xlu1 %389 }
 0x3e9   :  { %v394_v10 = vmul.f32 %v1916_v4, %v390_v7 }
 0x3ea   :  { %v388_v12 = vpop.permute.xlu0 %387 }
 0x3eb   :  { %v393_v13 = vmul.f32 %v1918_v11, %v388_v12  ;;  %399 = vrot.lane.b32.xlu1 %v394_v10, %s2005_s12 }
 0x3ed   :  { %397 = vrot.lane.b32.xlu0 %v393_v13, %s2005_s12 }
 0x45d   :  { %v400_v14 = vpop.permute.xlu1 %399 }
 0x45e   :  { %v404_v15 = vadd.f32 %v400_v14, %v2145_v18 }
 0x45f   :  { %v398_v16 = vpop.permute.xlu0 %397 }
 0x460   :  { %1919 = vtanh.f32 %v404_v15  ;;  %v403_v19 = vadd.f32 %v398_v16, %v2143_v17 }
 0x462   :  { %1921 = vtanh.f32 %v403_v19 }
 0x46d   :  { %v1920_v20 = vpop.eup %1919 }
 0x46e   :  { %413 = vrot.lane.b32.xlu1 %v1920_v20, %s2006_s3 }
 0x46f   :  { %v1922_v21 = vpop.eup %1921 }
 0x470   :  { %411 = vrot.lane.b32.xlu0 %v1922_v21, %s2006_s3 }
 0x4e0   :  { %v414_v22 = vpop.permute.xlu1 %413 }
 0x4e1   :  { %v418_v27 = vmul.f32 %v414_v22, %v408_v23 }
 0x4e2   :  { %v412_v26 = vpop.permute.xlu0 %411 }
 0x4e3   :  { %v417_v29 = vmul.f32 %v412_v26, %v407_v24  ;;  %v2188_v32 = vadd.f32 %v423_v30, %v418_v27 }
 0x4e5   :  { %v2186_v31 = vadd.f32 %v422_v28, %v417_v29  ;;  %v569_v4 = vrot.slane %v2188_v32, 7 }
 0x4e7   :  { %v437_v33 = vrot.slane %v2186_v31, 1  ;;  %v568_v11 = vrot.slane %v2186_v31, 7 }
 0x4e9   :  { %v438_v34 = vsel %vm290_vm3, %v2188_v32, %v437_v33 }
 0x4ea   :  { %439 = vrot.lane.b32.xlu0 %v438_v34, %s2006_s3 }
 0x55c   :  { %v440_v35 = vpop.permute.xlu0 %439 }
 0x55d   :  { %1805 = vmatmul.mubr.msk.f32.vlgmr.msra.gmra.mxu1 %vm144_vm4, %v440_v35 }
 0x55e   :  { %1819 = vmatpush3.msra.mxu1 %v2071_v1  ;;  %1826 = vmatprep.mubr.msk.f32.mxu1 %vm2004_vm2, %v2003_v0 }
 0x55f   :  { %1820 = vmatprep.subr.mxu1 %v2003_v0 }
 0x560   :  { %1821 = vmatpush3.msra.mxu1 %v2089_v5 }
 0x561   :  { %1822 = vmatprep.subr.mxu1 %v2003_v0 }
 0x562   :  { %1823 = vmatpush3.msra.mxu1 %v2096_v6 }
 0x563   :  { %1824 = vmatprep.subr.mxu1 %v2003_v0 }
 0x564   :  { %1825 = vmatpush3.msra.mxu1 %v2106_v8 }
 0x565   :  { %1840 = vmatprep.subr.mxu1 %v2003_v0 }
 0x61d   :  { %v509_v36 = vpop.f32.mrf.mxu1 }
 0x61e   :  { %v532_v37 = vadd.f32 %v509_v36, %v2135_v9  ;;  %v514_v41 = vrot.slane %v509_v36, 6  ;;  %v515_v42 = vrot.slane %v509_v36, 7 }
 0x61f   :  { %v1806_v38 = vpop.f32.mrf.mxu1 }
 0x620   :  { %v535_v39 = vrot.slane %v532_v37, 7  ;;  %v534_v40 = vrot.slane %v532_v37, 6  ;;  %v518_v43 = vadd.f32 %v514_v41, %v2143_v17  ;;  %v519_v44 = vadd.f32 %v515_v42, %v2145_v18 }
 0x622   :  { %538 = vrot.lane.b32.xlu0 %v535_v39, %s2005_s12  ;;  %536 = vrot.lane.b32.xlu1 %v534_v40, %s2005_s12  ;;  %v1682_v45 = vmul.f32 -1.442695, %v518_v43  ;;  %v1683_v46 = vmul.f32 -1.442695, %v519_v44 }
 0x624   :  { %1923 = vpow2.f32 %v1682_v45 }
 0x625   :  { %1925 = vpow2.f32 %v1683_v46 }
 0x631   :  { %v1924_v47 = vpop.eup %1923 }
 0x632   :  { %v1926_v50 = vpop.eup %1925  ;;  %v526_v51 = vadd.f32 1.0, %v1924_v47 }
 0x633   :  { %v527_v52 = vadd.f32 1.0, %v1926_v50 }
 0x634   :  { %1927 = vrcp.f32 %v526_v51 }
 0x635   :  { %1929 = vrcp.f32 %v527_v52 }
 0x641   :  { %v1928_v53 = vpop.eup %1927 }
 0x642   :  { %v1930_v54 = vpop.eup %1929  ;;  %v556_v10 = vsub.f32 1.0, %v1928_v53  ;;  %v572_v15 = vmul.f32 %v1928_v53, %v568_v11 }
 0x643   :  { %v557_v3 = vsub.f32 1.0, %v1930_v54  ;;  %v573_v12 = vmul.f32 %v1930_v54, %v569_v4 }
 0x694   :  { %v539_v55 = vpop.permute.xlu0 %538  ;;  %v537_v56 = vpop.permute.xlu1 %536 }
 0x695   :  { %v543_v57 = vmul.f32 %v1930_v54, %v539_v55  ;;  %v542_v58 = vmul.f32 %v1928_v53, %v537_v56 }
 0x697   :  { %548 = vrot.lane.b32.xlu0 %v543_v57, %s2005_s12  ;;  %546 = vrot.lane.b32.xlu1 %v542_v58, %s2005_s12 }
 0x709   :  { %v549_v59 = vpop.permute.xlu0 %548  ;;  %v547_v60 = vpop.permute.xlu1 %546 }
 0x70a   :  { %v553_v61 = vadd.f32 %v549_v59, %v2145_v18  ;;  %v552_v62 = vadd.f32 %v547_v60, %v2143_v17 }
 0x70c   :  { %1931 = vtanh.f32 %v553_v61 }
 0x70d   :  { %1933 = vtanh.f32 %v552_v62 }
 0x719   :  { %v1932_v63 = vpop.eup %1931 }
 0x71a   :  { %v1934_v2 = vpop.eup %1933  ;;  %562 = vrot.lane.b32.xlu0 %v1932_v63, %s2006_s3 }
 0x71b   :  { %560 = vrot.lane.b32.xlu1 %v1934_v2, %s2006_s3 }
 0x78c   :  { %v563_v7 = vpop.permute.xlu0 %562 }
 0x78d   :  { %v567_v13 = vmul.f32 %v563_v7, %v557_v3  ;;  %v561_v14 = vpop.permute.xlu1 %560 }
 0x78e   :  { %v566_v16 = vmul.f32 %v561_v14, %v556_v10 }
 0x78f   :  { %v2218_v19 = vadd.f32 %v573_v12, %v567_v13 }
 0x790   :  { %v2220_v20 = vadd.f32 %v572_v15, %v566_v16 }
 0x791   :  { %v588_v21 = vrot.slane %v2218_v19, 1  ;;  %v720_v57 = vrot.slane %v2218_v19, 7 }
 0x792   :  { %v587_v22 = vrot.slane %v2220_v20, 2  ;;  %v719_v60 = vrot.slane %v2220_v20, 7 }
 0x794   :  { %v589_v23 = vsel %vm290_vm3, %v588_v21, %v587_v22 }
 0x795   :  { %590 = vrot.lane.b32.xlu1 %v589_v23, %s2006_s3 }
 0x807   :  { %v591_v24 = vpop.permute.xlu1 %590 }
 0x808   :  { %1816 = vmatmul.mubr.msk.f32.vlgmr.msra.gmra.mxu0 %vm144_vm4, %v591_v24 }
 0x809   :  { %1830 = vmatpush3.msra.mxu0 %v2071_v1  ;;  %1837 = vmatprep.mubr.msk.f32.mxu0 %vm2004_vm2, %v2003_v0 }
 0x80a   :  { %1831 = vmatprep.subr.mxu0 %v2003_v0 }
 0x80b   :  { %1832 = vmatpush3.msra.mxu0 %v2089_v5 }
 0x80c   :  { %1833 = vmatprep.subr.mxu0 %v2003_v0 }
 0x80d   :  { %1834 = vmatpush3.msra.mxu0 %v2096_v6 }
 0x80e   :  { %1835 = vmatprep.subr.mxu0 %v2003_v0 }
 0x80f   :  { %1836 = vmatpush3.msra.mxu0 %v2106_v8 }
 0x810   :  { %1851 = vmatprep.subr.mxu0 %v2003_v0 }
 0x8c8   :  { %v660_v25 = vpop.f32.mrf.mxu0 }
 0x8c9   :  { %v683_v26 = vadd.f32 %v660_v25, %v2135_v9  ;;  %v665_v30 = vrot.slane %v660_v25, 5  ;;  %v666_v33 = vrot.slane %v660_v25, 6 }
 0x8ca   :  { %v1817_v27 = vpop.f32.mrf.mxu0 }
 0x8cb   :  { %v686_v28 = vrot.slane %v683_v26, 6  ;;  %v685_v29 = vrot.slane %v683_v26, 5  ;;  %v669_v34 = vadd.f32 %v665_v30, %v2143_v17  ;;  %v670_v35 = vadd.f32 %v666_v33, %v2145_v18 }
 0x8cd   :  { %689 = vrot.lane.b32.xlu1 %v686_v28, %s2005_s12  ;;  %687 = vrot.lane.b32.xlu0 %v685_v29, %s2005_s12  ;;  %v1685_v36 = vmul.f32 -1.442695, %v669_v34  ;;  %v1686_v37 = vmul.f32 -1.442695, %v670_v35 }
 0x8cf   :  { %1935 = vpow2.f32 %v1685_v36 }
 0x8d0   :  { %1937 = vpow2.f32 %v1686_v37 }
 0x8dc   :  { %v1936_v38 = vpop.eup %1935 }
 0x8dd   :  { %v1938_v39 = vpop.eup %1937  ;;  %v677_v40 = vadd.f32 1.0, %v1936_v38 }
 0x8de   :  { %v678_v41 = vadd.f32 1.0, %v1938_v39 }
 0x8df   :  { %1939 = vrcp.f32 %v677_v40 }
 0x8e0   :  { %1941 = vrcp.f32 %v678_v41 }
 0x8ec   :  { %v1940_v42 = vpop.eup %1939 }
 0x8ed   :  { %v1942_v43 = vpop.eup %1941  ;;  %v707_v59 = vsub.f32 1.0, %v1940_v42  ;;  %v723_v2 = vmul.f32 %v1940_v42, %v719_v60 }
 0x8ee   :  { %v708_v56 = vsub.f32 1.0, %v1942_v43  ;;  %v724_v61 = vmul.f32 %v1942_v43, %v720_v57 }
 0x93f   :  { %v690_v44 = vpop.permute.xlu1 %689  ;;  %v688_v45 = vpop.permute.xlu0 %687 }
 0x940   :  { %v694_v46 = vmul.f32 %v1942_v43, %v690_v44  ;;  %v693_v47 = vmul.f32 %v1940_v42, %v688_v45 }
 0x942   :  { %699 = vrot.lane.b32.xlu1 %v694_v46, %s2005_s12  ;;  %697 = vrot.lane.b32.xlu0 %v693_v47, %s2005_s12 }
 0x9b4   :  { %v700_v50 = vpop.permute.xlu1 %699  ;;  %v698_v51 = vpop.permute.xlu0 %697 }
 0x9b5   :  { %v704_v52 = vadd.f32 %v700_v50, %v2145_v18  ;;  %v703_v53 = vadd.f32 %v698_v51, %v2143_v17 }
 0x9b7   :  { %1943 = vtanh.f32 %v704_v52 }
 0x9b8   :  { %1945 = vtanh.f32 %v703_v53 }
 0x9c4   :  { %v1944_v54 = vpop.eup %1943 }
 0x9c5   :  { %v1946_v55 = vpop.eup %1945  ;;  %713 = vrot.lane.b32.xlu1 %v1944_v54, %s2006_s3 }
 0x9c6   :  { %711 = vrot.lane.b32.xlu0 %v1946_v55, %s2006_s3 }
 0xa37   :  { %v714_v58 = vpop.permute.xlu1 %713 }
 0xa38   :  { %v718_v62 = vmul.f32 %v714_v58, %v708_v56  ;;  %v712_v63 = vpop.permute.xlu0 %711 }
 0xa39   :  { %v717_v3 = vmul.f32 %v712_v63, %v707_v59 }
 0xa3a   :  { %v2250_v4 = vadd.f32 %v724_v61, %v718_v62 }
 0xa3b   :  { %v2252_v7 = vadd.f32 %v723_v2, %v717_v3 }
 0xa3c   :  { %v739_v10 = vrot.slane %v2250_v4, 2  ;;  %v871_v50 = vrot.slane %v2250_v4, 7 }
 0xa3d   :  { %v738_v11 = vrot.slane %v2252_v7, 3  ;;  %v870_v53 = vrot.slane %v2252_v7, 7 }
 0xa3f   :  { %v740_v12 = vsel %vm290_vm3, %v739_v10, %v738_v11 }
 0xa40   :  { %741 = vrot.lane.b32.xlu0 %v740_v12, %s2006_s3 }
 0xab2   :  { %v742_v13 = vpop.permute.xlu0 %741 }
 0xab3   :  { %1827 = vmatmul.mubr.msk.f32.vlgmr.msra.gmra.mxu1 %vm144_vm4, %v742_v13 }
 0xab4   :  { %1841 = vmatpush3.msra.mxu1 %v2071_v1  ;;  %1848 = vmatprep.mubr.msk.f32.mxu1 %vm2004_vm2, %v2003_v0 }
 0xab5   :  { %1842 = vmatprep.subr.mxu1 %v2003_v0 }
 0xab6   :  { %1843 = vmatpush3.msra.mxu1 %v2089_v5 }
 0xab7   :  { %1844 = vmatprep.subr.mxu1 %v2003_v0 }
 0xab8   :  { %1845 = vmatpush3.msra.mxu1 %v2096_v6 }
 0xab9   :  { %1846 = vmatprep.subr.mxu1 %v2003_v0 }
 0xaba   :  { %1847 = vmatpush3.msra.mxu1 %v2106_v8 }
 0xb73   :  { %v811_v14 = vpop.f32.mrf.mxu1 }
 0xb74   :  { %v834_v15 = vadd.f32 %v811_v14, %v2135_v9  ;;  %v816_v23 = vrot.slane %v811_v14, 4  ;;  %v817_v24 = vrot.slane %v811_v14, 5 }
 0xb75   :  { %v1828_v16 = vpop.f32.mrf.mxu1 }
 0xb76   :  { %v837_v21 = vrot.slane %v834_v15, 5  ;;  %v836_v22 = vrot.slane %v834_v15, 4  ;;  %v820_v25 = vadd.f32 %v816_v23, %v2143_v17  ;;  %v821_v26 = vadd.f32 %v817_v24, %v2145_v18 }
 0xb78   :  { %840 = vrot.lane.b32.xlu0 %v837_v21, %s2005_s12  ;;  %838 = vrot.lane.b32.xlu1 %v836_v22, %s2005_s12  ;;  %v1688_v27 = vmul.f32 -1.442695, %v820_v25  ;;  %v1689_v28 = vmul.f32 -1.442695, %v821_v26 }
 0xb7a   :  { %1947 = vpow2.f32 %v1688_v27 }
 0xb7b   :  { %1949 = vpow2.f32 %v1689_v28 }
 0xb87   :  { %v1948_v29 = vpop.eup %1947 }
 0xb88   :  { %v1950_v30 = vpop.eup %1949  ;;  %v828_v33 = vadd.f32 1.0, %v1948_v29 }
 0xb89   :  { %v829_v34 = vadd.f32 1.0, %v1950_v30 }
 0xb8a   :  { %1951 = vrcp.f32 %v828_v33 }
 0xb8b   :  { %1953 = vrcp.f32 %v829_v34 }
 0xb97   :  { %v1952_v35 = vpop.eup %1951 }
 0xb98   :  { %v1954_v36 = vpop.eup %1953  ;;  %v858_v52 = vsub.f32 1.0, %v1952_v35  ;;  %v874_v57 = vmul.f32 %v1952_v35, %v870_v53 }
 0xb99   :  { %v859_v47 = vsub.f32 1.0, %v1954_v36  ;;  %v875_v54 = vmul.f32 %v1954_v36, %v871_v50 }
 0xbea   :  { %v841_v37 = vpop.permute.xlu0 %840  ;;  %v839_v38 = vpop.permute.xlu1 %838 }
 0xbeb   :  { %v845_v39 = vmul.f32 %v1954_v36, %v841_v37  ;;  %v844_v40 = vmul.f32 %v1952_v35, %v839_v38 }
 0xbed   :  { %850 = vrot.lane.b32.xlu0 %v845_v39, %s2005_s12  ;;  %848 = vrot.lane.b32.xlu1 %v844_v40, %s2005_s12 }
 0xc5f   :  { %v851_v41 = vpop.permute.xlu0 %850  ;;  %v849_v42 = vpop.permute.xlu1 %848 }
 0xc60   :  { %v855_v43 = vadd.f32 %v851_v41, %v2145_v18  ;;  %v854_v44 = vadd.f32 %v849_v42, %v2143_v17 }
 0xc62   :  { %1955 = vtanh.f32 %v855_v43 }
 0xc63   :  { %1957 = vtanh.f32 %v854_v44 }
 0xc6f   :  { %v1956_v45 = vpop.eup %1955 }
 0xc70   :  { %v1958_v46 = vpop.eup %1957  ;;  %864 = vrot.lane.b32.xlu0 %v1956_v45, %s2006_s3 }
 0xc71   :  { %862 = vrot.lane.b32.xlu1 %v1958_v46, %s2006_s3 }
 0xce2   :  { %v865_v51 = vpop.permute.xlu0 %864 }
 0xce3   :  { %v869_v55 = vmul.f32 %v865_v51, %v859_v47  ;;  %v863_v56 = vpop.permute.xlu1 %862 }
 0xce4   :  { %v868_v58 = vmul.f32 %v863_v56, %v858_v52 }
 0xce5   :  { %v2281_v59 = vadd.f32 %v875_v54, %v869_v55 }
 0xce6   :  { %v2283_v60 = vadd.f32 %v874_v57, %v868_v58 }
 0xce7   :  { %v890_v61 = vrot.slane %v2281_v59, 3  ;;  %v1022_v38 = vrot.slane %v2281_v59, 7 }
 0xce8   :  { %v889_v62 = vrot.slane %v2283_v60, 4  ;;  %v1021_v41 = vrot.slane %v2283_v60, 7 }
 0xcea   :  { %v891_v63 = vsel %vm290_vm3, %v890_v61, %v889_v62 }
 0xceb   :  { %892 = vrot.lane.b32.xlu1 %v891_v63, %s2006_s3 }
 0xd5d   :  { %v893_v2 = vpop.permute.xlu1 %892 }
 0xd5e   :  { %1838 = vmatmul.mubr.msk.f32.vlgmr.msra.gmra.mxu0 %vm144_vm4, %v893_v2 }
 0xd5f   :  { %1852 = vmatpush3.msra.mxu0 %v2071_v1  ;;  %1859 = vmatprep.mubr.msk.f32.mxu0 %vm2004_vm2, %v2003_v0 }
 0xd60   :  { %1853 = vmatprep.subr.mxu0 %v2003_v0 }
 0xd61   :  { %1854 = vmatpush3.msra.mxu0 %v2089_v5 }
 0xd62   :  { %1855 = vmatprep.subr.mxu0 %v2003_v0 }
 0xd63   :  { %1856 = vmatpush3.msra.mxu0 %v2096_v6 }
 0xd64   :  { %1857 = vmatprep.subr.mxu0 %v2003_v0 }
 0xd65   :  { %1858 = vmatpush3.msra.mxu0 %v2106_v8 }
 0xe1e   :  { %v962_v3 = vpop.f32.mrf.mxu0 }
 0xe1f   :  { %v985_v10 = vadd.f32 %v962_v3, %v2135_v9  ;;  %v967_v13 = vrot.slane %v962_v3, 3  ;;  %v968_v5 = vrot.slane %v962_v3, 4 }
 0xe20   :  { %v1839_v11 = vpop.f32.mrf.mxu0 }
 0xe21   :  { %v988_v1 = vrot.slane %v985_v10, 4  ;;  %v987_v12 = vrot.slane %v985_v10, 3  ;;  %v971_v14 = vadd.f32 %v967_v13, %v2143_v17  ;;  %v972_v6 = vadd.f32 %v968_v5, %v2145_v18 }
 0xe23   :  { %991 = vrot.lane.b32.xlu1 %v988_v1, %s2005_s12  ;;  %989 = vrot.lane.b32.xlu0 %v987_v12, %s2005_s12  ;;  %v1691_v15 = vmul.f32 -1.442695, %v971_v14  ;;  %v1692_v0 = vmul.f32 -1.442695, %v972_v6 }
 0xe25   :  { %1959 = vpow2.f32 %v1691_v15 }
 0xe26   :  { %1961 = vpow2.f32 %v1692_v0 }
 0xe32   :  { %v1960_v8 = vpop.eup %1959 }
 0xe33   :  { %v1962_v16 = vpop.eup %1961  ;;  %v979_v21 = vadd.f32 1.0, %v1960_v8 }
 0xe34   :  { %v980_v22 = vadd.f32 1.0, %v1962_v16 }
 0xe35   :  { %1963 = vrcp.f32 %v979_v21 }
 0xe36   :  { %1965 = vrcp.f32 %v980_v22 }
 0xe42   :  { %v1964_v23 = vpop.eup %1963 }
 0xe43   :  { %v1966_v24 = vpop.eup %1965  ;;  %v1009_v40 = vsub.f32 1.0, %v1964_v23  ;;  %v1025_v45 = vmul.f32 %v1964_v23, %v1021_v41 }
 0xe44   :  { %v1010_v37 = vsub.f32 1.0, %v1966_v24  ;;  %v1026_v42 = vmul.f32 %v1966_v24, %v1022_v38 }
 0xe95   :  { %v992_v25 = vpop.permute.xlu1 %991  ;;  %v990_v26 = vpop.permute.xlu0 %989 }
 0xe96   :  { %v996_v27 = vmul.f32 %v1966_v24, %v992_v25  ;;  %v995_v28 = vmul.f32 %v1964_v23, %v990_v26 }
 0xe98   :  { %1001 = vrot.lane.b32.xlu1 %v996_v27, %s2005_s12  ;;  %999 = vrot.lane.b32.xlu0 %v995_v28, %s2005_s12 }
 0xf0a   :  { %v1002_v29 = vpop.permute.xlu1 %1001  ;;  %v1000_v30 = vpop.permute.xlu0 %999 }
 0xf0b   :  { %v1006_v33 = vadd.f32 %v1002_v29, %v2145_v18  ;;  %v1005_v34 = vadd.f32 %v1000_v30, %v2143_v17 }
 0xf0d   :  { %1967 = vtanh.f32 %v1006_v33 }
 0xf0e   :  { %1969 = vtanh.f32 %v1005_v34 }
 0xf1a   :  { %v1968_v35 = vpop.eup %1967 }
 0xf1b   :  { %v1970_v36 = vpop.eup %1969  ;;  %1015 = vrot.lane.b32.xlu1 %v1968_v35, %s2006_s3 }
 0xf1c   :  { %1013 = vrot.lane.b32.xlu0 %v1970_v36, %s2006_s3 }
 0xf8d   :  { %v1016_v39 = vpop.permute.xlu1 %1015 }
 0xf8e   :  { %v1020_v43 = vmul.f32 %v1016_v39, %v1010_v37  ;;  %v1014_v44 = vpop.permute.xlu0 %1013 }
 0xf8f   :  { %v1019_v46 = vmul.f32 %v1014_v44, %v1009_v40 }
 0xf90   :  { %v2312_v47 = vadd.f32 %v1026_v42, %v1020_v43 }
 0xf91   :  { %v2314_v50 = vadd.f32 %v1025_v45, %v1019_v46 }
 0xf92   :  { %v1041_v51 = vrot.slane %v2312_v47, 4  ;;  %v1173_v28 = vrot.slane %v2312_v47, 7 }
 0xf93   :  { %v1040_v52 = vrot.slane %v2314_v50, 5  ;;  %v1172_v33 = vrot.slane %v2314_v50, 7 }
 0xf95   :  { %v1042_v53 = vsel %vm290_vm3, %v1041_v51, %v1040_v52 }
 0xf96   :  { %1043 = vrot.lane.b32.xlu0 %v1042_v53, %s2006_s3 }
0x1008   :  { %v1044_v54 = vpop.permute.xlu0 %1043 }
0x1009   :  { %1849 = vmatmul.mubr.msk.f32.vlgmr.msra.gmra.mxu1 %vm144_vm4, %v1044_v54 }
0x10c9   :  { %v1113_v55 = vpop.f32.mrf.mxu1 }
0x10ca   :  { %v1136_v56 = vadd.f32 %v1113_v55, %v2135_v9  ;;  %v1118_v62 = vrot.slane %v1113_v55, 2  ;;  %v1119_v63 = vrot.slane %v1113_v55, 3 }
0x10cb   :  { %v1850_v57 = vpop.f32.mrf.mxu1 }
0x10cc   :  { %v1139_v58 = vrot.slane %v1136_v56, 3  ;;  %v1138_v61 = vrot.slane %v1136_v56, 2  ;;  %v1122_v2 = vadd.f32 %v1118_v62, %v2143_v17  ;;  %v1123_v3 = vadd.f32 %v1119_v63, %v2145_v18 }
0x10ce   :  { %1142 = vrot.lane.b32.xlu0 %v1139_v58, %s2005_s12  ;;  %1140 = vrot.lane.b32.xlu1 %v1138_v61, %s2005_s12  ;;  %v1694_v10 = vmul.f32 -1.442695, %v1122_v2  ;;  %v1695_v11 = vmul.f32 -1.442695, %v1123_v3 }
0x10d0   :  { %1971 = vpow2.f32 %v1694_v10 }
0x10d1   :  { %1973 = vpow2.f32 %v1695_v11 }
0x10dd   :  { %v1972_v1 = vpop.eup %1971 }
0x10de   :  { %v1974_v12 = vpop.eup %1973  ;;  %v1130_v13 = vadd.f32 1.0, %v1972_v1 }
0x10df   :  { %v1131_v5 = vadd.f32 1.0, %v1974_v12 }
0x10e0   :  { %1975 = vrcp.f32 %v1130_v13 }
0x10e1   :  { %1977 = vrcp.f32 %v1131_v5 }
0x10ed   :  { %v1976_v14 = vpop.eup %1975 }
0x10ee   :  { %v1978_v6 = vpop.eup %1977  ;;  %v1160_v30 = vsub.f32 1.0, %v1976_v14  ;;  %v1176_v37 = vmul.f32 %v1976_v14, %v1172_v33 }
0x10ef   :  { %v1161_v27 = vsub.f32 1.0, %v1978_v6  ;;  %v1177_v34 = vmul.f32 %v1978_v6, %v1173_v28 }
0x1140   :  { %v1143_v15 = vpop.permute.xlu0 %1142  ;;  %v1141_v0 = vpop.permute.xlu1 %1140 }
0x1141   :  { %v1147_v8 = vmul.f32 %v1978_v6, %v1143_v15  ;;  %v1146_v16 = vmul.f32 %v1976_v14, %v1141_v0 }
0x1143   :  { %1152 = vrot.lane.b32.xlu0 %v1147_v8, %s2005_s12  ;;  %1150 = vrot.lane.b32.xlu1 %v1146_v16, %s2005_s12 }
0x11b5   :  { %v1153_v21 = vpop.permute.xlu0 %1152  ;;  %v1151_v22 = vpop.permute.xlu1 %1150 }
0x11b6   :  { %v1157_v23 = vadd.f32 %v1153_v21, %v2145_v18  ;;  %v1156_v24 = vadd.f32 %v1151_v22, %v2143_v17 }
0x11b8   :  { %1979 = vtanh.f32 %v1157_v23 }
0x11b9   :  { %1981 = vtanh.f32 %v1156_v24 }
0x11c5   :  { %v1980_v25 = vpop.eup %1979 }
0x11c6   :  { %v1982_v26 = vpop.eup %1981  ;;  %1166 = vrot.lane.b32.xlu0 %v1980_v25, %s2006_s3 }
0x11c7   :  { %1164 = vrot.lane.b32.xlu1 %v1982_v26, %s2006_s3 }
0x1238   :  { %v1167_v29 = vpop.permute.xlu0 %1166 }
0x1239   :  { %v1171_v35 = vmul.f32 %v1167_v29, %v1161_v27  ;;  %v1165_v36 = vpop.permute.xlu1 %1164 }
0x123a   :  { %v1170_v38 = vmul.f32 %v1165_v36, %v1160_v30 }
0x123b   :  { %v2334_v39 = vadd.f32 %v1177_v34, %v1171_v35 }
0x123c   :  { %v2336_v40 = vadd.f32 %v1176_v37, %v1170_v38 }
0x123d   :  { %v1192_v41 = vrot.slane %v2334_v39, 5 }
0x123e   :  { %v1191_v42 = vrot.slane %v2336_v40, 6 }
0x1240   :  { %v1193_v43 = vsel %vm290_vm3, %v1192_v41, %v1191_v42  ;;  %v1441_v42 = vld [vmem:[%s2465_s7 + $0x18] sm:$0xff] }
0x1241   :  { %1194 = vrot.lane.b32.xlu1 %v1193_v43, %s2006_s3  ;;  %1873 = vmatprep.subr.mxu0 %v1441_v42  ;;  %v1440_v43 = vld [vmem:[%s2465_s7 + $0x10] sm:$0xff] }
0x12b3   :  { %v1195_v44 = vpop.permute.xlu1 %1194 }
0x12b4   :  { %1860 = vmatmul.mubr.msk.f32.vlgmr.msra.gmra.mxu0 %vm144_vm4, %v1195_v44  ;;  %v1439_v44 = vld [vmem:[%s2465_s7 + $0x8] sm:$0xff] }
0x12b5   :  { %1874 = vmatpush3.msra.mxu0 %v1441_v42 }
0x12b6   :  { %1875 = vmatprep.subr.mxu0 %v1440_v43 }
0x12b7   :  { %1876 = vmatpush3.msra.mxu0 %v1440_v43 }
0x12b8   :  { %1877 = vmatprep.subr.mxu0 %v1439_v44 }
0x12b9   :  { %1878 = vmatpush3.msra.mxu0 %v1439_v44 }
0x1374   :  { %v1264_v45 = vpop.f32.mrf.mxu0 }
0x1375   :  { %v1287_v46 = vadd.f32 %v1264_v45, %v2135_v9  ;;  %v1269_v54 = vrot.slane %v1264_v45, 1  ;;  %v1270_v55 = vrot.slane %v1264_v45, 2  ;;  %v1438_v45 = vld [vmem:[%s2465_s7] sm:$0xff] }
0x1376   :  { %v1861_v51 = vpop.f32.mrf.mxu0  ;;  %1879 = vmatprep.subr.mxu0 %v1438_v45 }
0x1377   :  { %v1290_v52 = vrot.slane %v1287_v46, 2  ;;  %v1289_v53 = vrot.slane %v1287_v46, 1  ;;  %v1273_v56 = vadd.f32 %v1269_v54, %v2143_v17  ;;  %v1274_v57 = vadd.f32 %v1270_v55, %v2145_v18  ;;  %1880 = vmatpush3.msra.mxu0 %v1438_v45  ;;  %v1699_v46 = vld [vmem:[%s2466_s6] ss:$0 sm:$0xff] }
0x1379   :  { %1293 = vrot.lane.b32.xlu1 %v1290_v52, %s2005_s12  ;;  %1291 = vrot.lane.b32.xlu0 %v1289_v53, %s2005_s12  ;;  %v1697_v58 = vmul.f32 -1.442695, %v1273_v56  ;;  %v1698_v61 = vmul.f32 -1.442695, %v1274_v57  ;;  %v1535_v57 = vld [vmem:[%s2467_s9 + $0x18] sm:$0xff] }
0x137b   :  { %1983 = vpow2.f32 %v1697_v58  ;;  %v1534_v58 = vld [vmem:[%s2467_s9 + $0x10] sm:$0xff] }
0x137c   :  { %1985 = vpow2.f32 %v1698_v61  ;;  %v1533_v61 = vld [vmem:[%s2467_s9 + $0x8] sm:$0xff] }
0x1388   :  { %v1984_v62 = vpop.eup %1983 }
0x1389   :  { %v1986_v63 = vpop.eup %1985  ;;  %v1281_v9 = vadd.f32 1.0, %v1984_v62  ;;  %v1532_v62 = vld [vmem:[%s2467_s9] sm:$0xff] }
0x138a   :  { %v1282_v2 = vadd.f32 1.0, %v1986_v63  ;;  %v1702_v63 = vld [vmem:[%s2468_s8] ss:$0 sm:$0xff] }
0x138b   :  { %1987 = vrcp.f32 %v1281_v9 }
0x138c   :  { %1989 = vrcp.f32 %v1282_v2 }
0x1398   :  { %v1988_v3 = vpop.eup %1987 }
0x1399   :  { %v1990_v10 = vpop.eup %1989 }
0x13eb   :  { %v1294_v11 = vpop.permute.xlu1 %1293  ;;  %v1292_v1 = vpop.permute.xlu0 %1291 }
0x13ec   :  { %v1298_v12 = vmul.f32 %v1990_v10, %v1294_v11  ;;  %v1297_v13 = vmul.f32 %v1988_v3, %v1292_v1 }
0x13ee   :  { %1303 = vrot.lane.b32.xlu1 %v1298_v12, %s2005_s12  ;;  %1301 = vrot.lane.b32.xlu0 %v1297_v13, %s2005_s12  ;;  %v1705_v12 = vld [vmem:[%s2469_s10] ss:$0 sm:$0xff] }
0x1460   :  { %v1304_v5 = vpop.permute.xlu1 %1303  ;;  %v1302_v14 = vpop.permute.xlu0 %1301 }
0x1461   :  { %v1308_v6 = vadd.f32 %v1304_v5, %v2145_v18  ;;  %v1307_v15 = vadd.f32 %v1302_v14, %v2143_v17  ;;  %v1347_v17 = vld [vmem:[%s2464_s5 + $0x18] sm:$0xff]  ;;  %v1346_v18 = vld [vmem:[%s2464_s5 + $0x10] sm:$0xff] }
0x1462   :  { %1862 = vmatprep.subr.mxu1 %v1347_v17 }
0x1463   :  { %1991 = vtanh.f32 %v1308_v6  ;;  %1863 = vmatpush3.msra.mxu1 %v1347_v17 }
0x1464   :  { %1993 = vtanh.f32 %v1307_v15  ;;  %1864 = vmatprep.subr.mxu1 %v1346_v18 }
0x1465   :  { %1865 = vmatpush3.msra.mxu1 %v1346_v18 }
0x1470   :  { %v1992_v0 = vpop.eup %1991 }
0x1471   :  { %v1994_v8 = vpop.eup %1993  ;;  %1317 = vrot.lane.b32.xlu1 %v1992_v0, %s2006_s3 }
0x1472   :  { %1315 = vrot.lane.b32.xlu0 %v1994_v8, %s2006_s3 }
0x1475   :  { %428 = vrot.lane.b32.xlu1 %v2186_v31, %s2006_s3  ;;  %v1311_v31 = vsub.f32 1.0, %v1988_v3 }
0x1476   :  { %280 = vrot.lane.b32.xlu0 %v2157_v49, %s2006_s3 }
0x1479   :  { %729 = vrot.lane.b32.xlu1 %v2252_v7, %s2006_s3 }
0x147a   :  { %578 = vrot.lane.b32.xlu0 %v2220_v20, %s2006_s3  ;;  %v1344_v20 = vld [vmem:[%s2464_s5] sm:$0xff] }
0x147d   :  { %1031 = vrot.lane.b32.xlu1 %v2314_v50, %s2006_s3 }
0x147e   :  { %880 = vrot.lane.b32.xlu0 %v2283_v60, %s2006_s3  ;;  %v1324_v60 = vrot.slane %v2334_v39, 7 }
0x1480   :  { %v1328_v22 = vmul.f32 %v1990_v10, %v1324_v60 }
0x1481   :  { %430 = vrot.lane.b32.xlu1 %v2188_v32, %s2006_s3  ;;  %v1323_v32 = vrot.slane %v2336_v40, 7 }
0x1482   :  { %1182 = vrot.lane.b32.xlu0 %v2336_v40, %s2006_s3 }
0x1483   :  { %v1327_v7 = vmul.f32 %v1988_v3, %v1323_v32 }
0x1485   :  { %731 = vrot.lane.b32.xlu1 %v2250_v4, %s2006_s3  ;;  %v1312_v4 = vsub.f32 1.0, %v1990_v10 }
0x1486   :  { %282 = vrot.lane.b32.xlu0 %v2155_v48, %s2006_s3  ;;  %v1345_v48 = vld [vmem:[%s2464_s5 + $0x8] sm:$0xff] }
0x1487   :  { %1866 = vmatprep.subr.mxu1 %v1345_v48 }
0x1488   :  { %1867 = vmatpush3.msra.mxu1 %v1345_v48 }
0x1489   :  { %1033 = vrot.lane.b32.xlu1 %v2312_v47, %s2006_s3  ;;  %1868 = vmatprep.subr.mxu1 %v1344_v20 }
0x148a   :  { %580 = vrot.lane.b32.xlu0 %v2218_v19, %s2006_s3  ;;  %1869 = vmatpush3.msra.mxu1 %v1344_v20 }
0x148b   :  { %1884 = vmatprep.subr.mxu1 %v1535_v57 }
0x148e   :  { %882 = vrot.lane.b32.xlu0 %v2281_v59, %s2006_s3 }
0x1492   :  { %1184 = vrot.lane.b32.xlu0 %v2334_v39, %s2006_s3 }
0x14e3   :  { %v1318_v49 = vpop.permute.xlu1 %1317 }
0x14e4   :  { %v1316_v19 = vpop.permute.xlu0 %1315  ;;  %v1322_v47 = vmul.f32 %v1318_v49, %v1312_v4 }
0x14e5   :  { %v1321_v59 = vmul.f32 %v1316_v19, %v1311_v31 }
0x14e6   :  { %v1330_v23 = vadd.f32 %v1328_v22, %v1322_v47 }
0x14e7   :  { %v1329_v50 = vadd.f32 %v1327_v7, %v1321_v59  ;;  %v429_v16 = vpop.permute.xlu1 %428  ;;  %v1624_v7 = vlaneseq }
0x14e8   :  { %435 = vst.msk [vmem:[#allocation2] sm:$0x2] %vm434_vm5, %v429_v16  ;;  %v281_v21 = vpop.permute.xlu0 %280 }
0x14e9   :  { %287 = vst.msk [vmem:[#allocation2] sm:$0x1] %vm286_vm6, %v281_v21  ;;  %1333 = vrot.lane.b32.xlu1 %v1329_v50, %s2006_s3  ;;  %v1625_v16 = vand.u32 127, %v1624_v7 }
0x14eb   :  { %v730_v24 = vpop.permute.xlu1 %729  ;;  %vm1626_vm14 = vcmp.lt.s32.totalorder %v1625_v16, 16 }
0x14ec   :  { %736 = vst.msk [vmem:[#allocation2] sm:$0x8] %vm735_vm7, %v730_v24  ;;  %v579_v25 = vpop.permute.xlu0 %578 }
0x14ed   :  { %585 = vst.msk [vmem:[#allocation2] sm:$0x4] %vm584_vm8, %v579_v25  ;;  %1335 = vrot.lane.b32.xlu1 %v1330_v23, %s2006_s3 }
0x14ef   :  { %v1032_v26 = vpop.permute.xlu1 %1031 }
0x14f0   :  { %1038 = vst.msk [vmem:[#allocation2] sm:$0x20] %vm1037_vm9, %v1032_v26  ;;  %v881_v27 = vpop.permute.xlu0 %880 }
0x14f1   :  { %887 = vst.msk [vmem:[#allocation2] sm:$0x10] %vm886_vm10, %v881_v27 }
0x14f3   :  { %v431_v28 = vpop.permute.xlu1 %430 }
0x14f4   :  { %436 = vst.msk [vmem:[#allocation2 + $0x8] sm:$0x2] %vm434_vm5, %v431_v28  ;;  %v1183_v29 = vpop.permute.xlu0 %1182 }
0x14f5   :  { %1189 = vst.msk [vmem:[#allocation2] sm:$0x40] %vm1188_vm11, %v1183_v29 }
0x14f7   :  { %v732_v30 = vpop.permute.xlu1 %731 }
0x14f8   :  { %737 = vst.msk [vmem:[#allocation2 + $0x8] sm:$0x8] %vm735_vm7, %v732_v30  ;;  %v283_v33 = vpop.permute.xlu0 %282 }
0x14f9   :  { %288 = vst.msk [vmem:[#allocation2 + $0x8] sm:$0x1] %vm286_vm6, %v283_v33 }
0x14fb   :  { %v1034_v34 = vpop.permute.xlu1 %1033 }
0x14fc   :  { %1039 = vst.msk [vmem:[#allocation2 + $0x8] sm:$0x20] %vm1037_vm9, %v1034_v34  ;;  %v581_v35 = vpop.permute.xlu0 %580 }
0x14fd   :  { %586 = vst.msk [vmem:[#allocation2 + $0x8] sm:$0x4] %vm584_vm8, %v581_v35 }
0x1500   :  { %v883_v36 = vpop.permute.xlu0 %882 }
0x1501   :  { %888 = vst.msk [vmem:[#allocation2 + $0x8] sm:$0x10] %vm886_vm10, %v883_v36 }
0x1504   :  { %v1185_v37 = vpop.permute.xlu0 %1184 }
0x1505   :  { %1190 = vst.msk [vmem:[#allocation2 + $0x8] sm:$0x40] %vm1188_vm11, %v1185_v37 }
0x155b   :  { %v1334_v38 = vpop.permute.xlu1 %1333 }
0x155c   :  { %1340 = vst.msk [vmem:[#allocation2] sm:$0x80] %vm1339_vm12, %v1334_v38 }
0x155f   :  { %v1336_v39 = vpop.permute.xlu1 %1335 }
0x1560   :  { %1341 = vst.msk [vmem:[#allocation2 + $0x8] sm:$0x80] %vm1339_vm12, %v1336_v39 }
0x1563   :  { %v1342_v40 = vld [vmem:[#allocation2] sm:$0xff] }
0x1564   :  { %1870 = vmatprep.mubr.msk.f32.mxu1 %vm144_vm4, %v1342_v40 }
0x1567   :  { %v1343_v41 = vld [vmem:[#allocation2 + $0x8] sm:$0xff] }
0x1568   :  { %1871 = vmatmul.mubr.msk.f32.vlgmr.msra.gmra.mxu1 %vm144_vm4, %v1343_v41 }
0x1569   :  { %1885 = vmatpush3.msra.mxu1 %v1535_v57 }
0x156a   :  { %1886 = vmatprep.subr.mxu1 %v1534_v58 }
0x156b   :  { %1887 = vmatpush3.msra.mxu1 %v1534_v58 }
0x156c   :  { %1888 = vmatprep.subr.mxu1 %v1533_v61 }
0x156d   :  { %1889 = vmatpush3.msra.mxu1 %v1533_v61 }
0x156e   :  { %1890 = vmatprep.subr.mxu1 %v1532_v62 }
0x156f   :  { %1891 = vmatpush3.msra.mxu1 %v1532_v62 }
0x1628   :  { %v1872_v51 = vpop.f32.mrf.mxu1 }
0x1629   :  { %v1433_v52 = vadd.f32 %v1872_v51, %v1699_v46 }
0x162a   :  { %v1427_v53 = vpop.f32.mrf.mxu1 }
0x162b   :  { %v1428_v54 = vadd.f32 %v1699_v46, %v1427_v53  ;;  %v1437_v56 = vmax.f32 %v1433_v52, 0.0 }
0x162d   :  { %v1436_v55 = vmax.f32 %v1428_v54, 0.0 }
0x162f   :  { %1881 = vmatprep.mubr.msk.f32.mxu0 %vm144_vm4, %v1436_v55 }
0x1630   :  { %1882 = vmatmul.mubr.msk.f32.vlgmr.msra.gmra.mxu0 %vm144_vm4, %v1437_v56 }
0x16f0   :  { %v1883_v9 = vpop.f32.mrf.mxu0 }
0x16f1   :  { %v1527_v2 = vadd.f32 %v1883_v9, %v1702_v63 }
0x16f2   :  { %v1521_v3 = vpop.f32.mrf.mxu0 }
0x16f3   :  { %v1522_v10 = vadd.f32 %v1702_v63, %v1521_v3  ;;  %v1531_v1 = vmax.f32 %v1527_v2, 0.0 }
0x16f5   :  { %v1530_v11 = vmax.f32 %v1522_v10, 0.0 }
0x16f7   :  { %1892 = vmatprep.mubr.msk.f32.mxu1 %vm144_vm4, %v1530_v11 }
0x16f8   :  { %1893 = vmatmul.mubr.msk.f32.vlgmr.msra.gmra.mxu1 %vm144_vm4, %v1531_v1 }
0x17b8   :  { %v1894_v13 = vpop.f32.mrf.mxu1 }
0x17b9   :  { %v1621_v5 = vadd.f32 %v1894_v13, %v1705_v12 }
0x17ba   :  { %v1615_v14 = vpop.f32.mrf.mxu1 }
0x17bb   :  { %v1634_v6 = vand.u32 2147483647, %v1621_v5  ;;  %v1616_v15 = vadd.f32 %v1705_v12, %v1615_v14  ;;  %v1628_v25 = vmax.f32 %v1621_v5, 0.0  ;;  %vm1630_vm0 = vcmp.ne.f32.partialorder %v1621_v5, %v1621_v5 }
0x17bd   :  { %v1636_v0 = vsub.f32 0.0, %v1634_v6  ;;  %v1633_v8 = vand.u32 2147483647, %v1616_v15  ;;  %v1627_v30 = vmax.f32 %v1616_v15, 0.0  ;;  %vm1629_vm1 = vcmp.ne.f32.partialorder %v1616_v15, %v1616_v15 }
0x17bf   :  { %v1639_v17 = vmul.f32 1.442695, %v1636_v0  ;;  %v1635_v18 = vsub.f32 0.0, %v1633_v8 }
0x17c1   :  { %1995 = vpow2.f32 %v1639_v17  ;;  %v1637_v48 = vmul.f32 1.442695, %v1635_v18 }
0x17c3   :  { %1997 = vpow2.f32 %v1637_v48 }
0x17ce   :  { %v1996_v49 = vpop.eup %1995 }
0x17cf   :  { %v1650_v31 = vadd.f32 1.0, %v1996_v49  ;;  %v1653_v20 = vmul.f32 -0.5, %v1996_v49  ;;  %v1656_v60 = vand.u32 2147483647, %v1996_v49 }
0x17d0   :  { %v1998_v32 = vpop.eup %1997 }
0x17d1   :  { %1999 = vlog2.f32 %v1650_v31  ;;  %v1641_v19 = vadd.f32 1.0, %v1998_v32  ;;  %v1644_v4 = vmul.f32 -0.5, %v1998_v32  ;;  %v1654_v59 = vadd.f32 1.0, %v1653_v20 }
0x17d2   :  { %v1647_v21 = vand.u32 2147483647, %v1998_v32  ;;  %vm1657_vm13 = vcmp.lt.f32.partialorder %v1656_v60, 0.0004427343 }
0x17d3   :  { %2001 = vlog2.f32 %v1641_v19  ;;  %v1645_v47 = vadd.f32 1.0, %v1644_v4  ;;  %v1655_v23 = vmul.f32 %v1996_v49, %v1654_v59 }
0x17d4   :  { %vm1648_vm15 = vcmp.lt.f32.partialorder %v1647_v21, 0.0004427343 }
0x17d5   :  { %v1646_v28 = vmul.f32 %v1998_v32, %v1645_v47 }
0x17de   :  { %v2000_v50 = vpop.eup %1999 }
0x17df   :  { %v1652_v22 = vmul.f32 0.6931472, %v2000_v50 }
0x17e0   :  { %v2002_v24 = vpop.eup %2001 }
0x17e1   :  { %v1658_v26 = vsel %vm1657_vm13, %v1655_v23, %v1652_v22  ;;  %v1643_v27 = vmul.f32 0.6931472, %v2002_v24 }
0x17e2   :  { %v1660_v29 = vadd.f32 %v1658_v26, %v1628_v25 }
0x17e3   :  { %v1649_v33 = vsel %vm1648_vm15, %v1646_v28, %v1643_v27 }
0x17e4   :  { %v1662_v34 = vsel %vm1630_vm0, %v1621_v5, %v1660_v29  ;;  %v1659_v35 = vadd.f32 %v1649_v33, %v1627_v30 }
0x17e5   :  { %v1664_v36 = vsel %vm1626_vm14, %v1621_v5, %v1662_v34 }
0x17e6   :  { %1666 = vst.msk [vmem:[%s2470_s11 + $0x8] sm:$0xff] %vm144_vm4, %v1664_v36  ;;  %v1661_v37 = vsel %vm1629_vm1, %v1616_v15, %v1659_v35 }
0x17e7   :  { %v1663_v38 = vsel %vm1626_vm14, %v1616_v15, %v1661_v37 }
0x17e8   :  { %1665 = vst.msk [vmem:[%s2470_s11] sm:$0xff] %vm144_vm4, %v1663_v38 }

</bundles_post_ra>
